<compile_context>
chip_gen: v7x
topology: tpu7x:2x2x1
jax: 0.10.0
libtpu: 0.0.40
codegen_flags: <defaults>
</compile_context>

<pallas_src>
import jax
import jax.numpy as jnp
from jax.experimental import pallas as pl
from jax.experimental.pallas import tpu as pltpu

EPS = 1e-5
H = 300                # hidden width of the three MLP layers
PACK_W = 384           # lane-padded width of the packed small-parameter array

# Row indices inside the packed [NUM_ROWS, PACK_W] parameter array.
R_W1A = 0              # last row of W1 (multiplies the bn(ddqn_a) column)   [300]
R_G1, R_BE1 = 1, 2     # BatchNorm1d(300) #1 gamma / beta                    [300]
R_G2, R_BE2 = 3, 4     # BatchNorm1d(300) #2 gamma / beta                    [300]
R_G3, R_BE3 = 5, 6     # BatchNorm1d(300) #3 gamma / beta                    [300]
R_B4 = 7               # output-layer bias                                   [A]
R_G0, R_BE0 = 8, 9     # BatchNorm1d(1) gamma / beta (scalar at lane 0)
NUM_ROWS = 10


def _bn_fused(z, gamma, beta):
    """Training-mode BatchNorm1d, single pass: fold gamma/beta into scale+shift."""
    inv_n = 1.0 / z.shape[0]
    mean = jnp.sum(z, axis=0, keepdims=True) * inv_n
    msq = jnp.sum(z * z, axis=0, keepdims=True) * inv_n
    var = jnp.maximum(msq - mean * mean, 0.0)          # biased variance
    scale = gamma * jax.lax.rsqrt(var + EPS)
    shift = beta - mean * scale
    return z * scale + shift


def actor_kernel(x_ref, a_ref, vec_ref, w1x_ref, w2_ref, w3_ref, w4_ref, out_ref):
    A = out_ref.shape[1]

    x = x_ref[...]                                     # [B, D]  f32
    a = a_ref[...]                                     # [B, 1]  f32

    # Unpack the small parameter vectors (static slices of one VMEM tile).
    w1a = vec_ref[R_W1A:R_W1A + 1, :H]                 # [1, 300]
    g1, be1 = vec_ref[R_G1:R_G1 + 1, :H], vec_ref[R_BE1:R_BE1 + 1, :H]
    g2, be2 = vec_ref[R_G2:R_G2 + 1, :H], vec_ref[R_BE2:R_BE2 + 1, :H]
    g3, be3 = vec_ref[R_G3:R_G3 + 1, :H], vec_ref[R_BE3:R_BE3 + 1, :H]
    b4 = vec_ref[R_B4:R_B4 + 1, :A]                    # [1, A]
    g0 = vec_ref[R_G0:R_G0 + 1, 0:1]                   # [1, 1]
    be0 = vec_ref[R_BE0:R_BE0 + 1, 0:1]                # [1, 1]

    # bn_input = BatchNorm1d(1) on ddqn_a (training mode, batch stats).
    a_bn = _bn_fused(a, g0, be0)                       # [B, 1]

    # Layer 1: Linear(D+1, 300). Instead of concatenating [x, a_bn] (odd lane
    # width), W1 is split: first D rows hit the MXU, the last row is applied to
    # the single a_bn column with a broadcast multiply. b1 is omitted: it is
    # exactly cancelled by the following training-mode BatchNorm.
    z1 = jnp.dot(x.astype(jnp.bfloat16), w1x_ref[...],
                 preferred_element_type=jnp.float32)
    z1 = z1 + a_bn * w1a
    h1 = jnp.maximum(_bn_fused(z1, g1, be1), 0.0)

    # Layer 2 (b2 cancelled by BN).
    z2 = jnp.dot(h1.astype(jnp.bfloat16), w2_ref[...],
                 preferred_element_type=jnp.float32)
    h2 = jnp.maximum(_bn_fused(z2, g2, be2), 0.0)

    # Layer 3 (b3 cancelled by BN).
    z3 = jnp.dot(h2.astype(jnp.bfloat16), w3_ref[...],
                 preferred_element_type=jnp.float32)
    h3 = jnp.maximum(_bn_fused(z3, g3, be3), 0.0)

    # Output layer + softmax over dim=1.
    logits = jnp.dot(h3.astype(jnp.bfloat16), w4_ref[...],
                     preferred_element_type=jnp.float32) + b4
    m = jnp.max(logits, axis=1, keepdims=True)
    e = jnp.exp(logits - m)
    s = jnp.sum(e, axis=1, keepdims=True)
    out_ref[...] = e * pl.reciprocal(s, approx=True)


def actor_forward(params, x, ddqn_a):
    B, D = x.shape
    A = params["w4"].shape[1]
    args = (x, ddqn_a, params["vec"],
            params["w1x"], params["w2"], params["w3"], params["w4"])
    vmem_spec = pl.BlockSpec(memory_space=pltpu.MemorySpace.VMEM)

    flops = 2 * B * (D * H + 2 * H * H + H * A)
    bytes_accessed = (
        x.size * 4 + ddqn_a.size * 4 + params["vec"].size * 4
        + sum(params[k].size * 2 for k in ("w1x", "w2", "w3", "w4"))
        + B * A * 4)
    cost = pl.CostEstimate(flops=flops,
                           transcendentals=B * A + 3 * H + 1,
                           bytes_accessed=bytes_accessed)

    # Gridless single call: training-mode BN needs full-batch statistics, and at
    # these shapes everything (weights ~370 KB bf16 + tiny activations) fits VMEM.
    # TODO(synk): for large batches, switch to a two-pass (stats, apply) scheme
    # with a batch grid ("parallel") so BN statistics stay full-batch.
    return pl.pallas_call(
        actor_kernel,
        out_shape=jax.ShapeDtypeStruct((B, A), jnp.float32),
        in_specs=[vmem_spec] * len(args),
        out_specs=vmem_spec,
        cost_estimate=cost,
    )(*args)


def init_params(key, input_dims, action_nums):
    """PyTorch-style uniform(-1/sqrt(fan_in), 1/sqrt(fan_in)) init; weights cast
    to bf16 for the MXU, small per-feature vectors packed into one f32 array."""
    dims = [input_dims + 1, H, H, H, action_nums]

    def linear(k, fan_in, fan_out):
        kw, kb = jax.random.split(k)
        bound = 1.0 / jnp.sqrt(float(fan_in))
        w = jax.random.uniform(kw, (fan_in, fan_out), jnp.float32, -bound, bound)
        b = jax.random.uniform(kb, (fan_out,), jnp.float32, -bound, bound)
        return w, b

    keys = jax.random.split(key, 4)
    w1, _b1 = linear(keys[0], dims[0], dims[1])   # b1 cancelled by BN
    w2, _b2 = linear(keys[1], dims[1], dims[2])   # b2 cancelled by BN
    w3, _b3 = linear(keys[2], dims[2], dims[3])   # b3 cancelled by BN
    w4, b4 = linear(keys[3], dims[3], dims[4])

    params = {
        "w1x": w1[:input_dims, :].astype(jnp.bfloat16),   # [D, 300]
        "w2": w2.astype(jnp.bfloat16),                    # [300, 300]
        "w3": w3.astype(jnp.bfloat16),                    # [300, 300]
        "w4": w4.astype(jnp.bfloat16),                    # [300, A]
    }

    vec = jnp.zeros((NUM_ROWS, PACK_W), jnp.float32)
    vec = vec.at[R_W1A, :H].set(w1[input_dims, :])        # last row of W1
    for r in (R_G1, R_G2, R_G3):
        vec = vec.at[r, :H].set(1.0)                      # BN gammas = 1
    # BN betas (rows R_BE1/R_BE2/R_BE3) stay 0.
    vec = vec.at[R_B4, :action_nums].set(b4)
    vec = vec.at[R_G0, 0].set(1.0)                        # BatchNorm1d(1) gamma
    # BatchNorm1d(1) beta (row R_BE0) stays 0.
    params["vec"] = vec
    return params


if __name__ == "__main__":
    # Small, forward-consistent shapes. (feature_nums/field_nums/latent_dims are
    # unused by Actor.forward, so they are omitted.)
    input_dims, action_nums, batch = 16, 8, 8

    key = jax.random.PRNGKey(0)
    kx, ka, kp = jax.random.split(key, 3)
    x = jax.random.normal(kx, (batch, input_dims), jnp.float32)       # `input`
    ddqn_a = jax.random.normal(ka, (batch, 1), jnp.float32)           # `ddqn_a`
    params = init_params(kp, input_dims, action_nums)

    out = jax.block_until_ready(actor_forward(params, x, ddqn_a))

    assert out.shape == (batch, action_nums)
    assert bool(jnp.all(jnp.isfinite(out)))
    assert bool(jnp.all(out >= 0.0))
    # softmax rows must sum to ~1 (approx reciprocal => loose tolerance)
    assert bool(jnp.allclose(jnp.sum(out, axis=1), 1.0, atol=1e-2))
    print("KERNEL_OK")
</pallas_src>

<mosaic_0001>
module attributes {stable_mosaic.version = 11 : i64} {
  func.func @actor_kernel(%arg0: memref<8x16xf32, #tpu.memory_space<vmem>>, %arg1: memref<8x1xf32, #tpu.memory_space<vmem>>, %arg2: memref<10x384xf32, #tpu.memory_space<vmem>>, %arg3: memref<16x300xbf16, #tpu.memory_space<vmem>>, %arg4: memref<300x300xbf16, #tpu.memory_space<vmem>>, %arg5: memref<300x300xbf16, #tpu.memory_space<vmem>>, %arg6: memref<300x8xbf16, #tpu.memory_space<vmem>>, %arg7: memref<8x8xf32, #tpu.memory_space<vmem>>) attributes {dimension_semantics = [], scalar_prefetch = 0 : i64, scratch_operands = 0 : i64, tpu.core_type = #tpu.core_type<tc>} {
    %c0 = arith.constant 0 : index
    %c0_0 = arith.constant 0 : index
    %0 = vector.load %arg0[%c0, %c0_0] : memref<8x16xf32, #tpu.memory_space<vmem>>, vector<8x16xf32>
    %c0_1 = arith.constant 0 : index
    %c0_2 = arith.constant 0 : index
    %1 = vector.load %arg1[%c0_1, %c0_2] : memref<8x1xf32, #tpu.memory_space<vmem>>, vector<8x1xf32>
    %c0_3 = arith.constant 0 : index
    %c0_4 = arith.constant 0 : index
    %2 = vector.load %arg2[%c0_3, %c0_4] : memref<10x384xf32, #tpu.memory_space<vmem>>, vector<1x300xf32>
    %c1 = arith.constant 1 : index
    %c0_5 = arith.constant 0 : index
    %3 = vector.load %arg2[%c1, %c0_5] : memref<10x384xf32, #tpu.memory_space<vmem>>, vector<1x300xf32>
    %c2 = arith.constant 2 : index
    %c0_6 = arith.constant 0 : index
    %4 = vector.load %arg2[%c2, %c0_6] : memref<10x384xf32, #tpu.memory_space<vmem>>, vector<1x300xf32>
    %c3 = arith.constant 3 : index
    %c0_7 = arith.constant 0 : index
    %5 = vector.load %arg2[%c3, %c0_7] : memref<10x384xf32, #tpu.memory_space<vmem>>, vector<1x300xf32>
    %c4 = arith.constant 4 : index
    %c0_8 = arith.constant 0 : index
    %6 = vector.load %arg2[%c4, %c0_8] : memref<10x384xf32, #tpu.memory_space<vmem>>, vector<1x300xf32>
    %c5 = arith.constant 5 : index
    %c0_9 = arith.constant 0 : index
    %7 = vector.load %arg2[%c5, %c0_9] : memref<10x384xf32, #tpu.memory_space<vmem>>, vector<1x300xf32>
    %c6 = arith.constant 6 : index
    %c0_10 = arith.constant 0 : index
    %8 = vector.load %arg2[%c6, %c0_10] : memref<10x384xf32, #tpu.memory_space<vmem>>, vector<1x300xf32>
    %c7 = arith.constant 7 : index
    %c0_11 = arith.constant 0 : index
    %9 = vector.load %arg2[%c7, %c0_11] : memref<10x384xf32, #tpu.memory_space<vmem>>, vector<1x8xf32>
    %c8 = arith.constant 8 : index
    %c0_12 = arith.constant 0 : index
    %10 = vector.load %arg2[%c8, %c0_12] : memref<10x384xf32, #tpu.memory_space<vmem>>, vector<1x1xf32>
    %c9 = arith.constant 9 : index
    %c0_13 = arith.constant 0 : index
    %11 = vector.load %arg2[%c9, %c0_13] : memref<10x384xf32, #tpu.memory_space<vmem>>, vector<1x1xf32>
    %cst = arith.constant dense<0.000000e+00> : vector<1xf32>
    %12 = vector.multi_reduction <add>, %1, %cst [0] : vector<8x1xf32> to vector<1xf32>
    %13 = vector.shape_cast %12 : vector<1xf32> to vector<1x1xf32>
    %cst_14 = arith.constant 1.250000e-01 : f32
    %14 = vector.broadcast %cst_14 : f32 to vector<1x1xf32>
    %15 = arith.mulf %13, %14 : vector<1x1xf32>
    %16 = arith.mulf %1, %1 : vector<8x1xf32>
    %cst_15 = arith.constant dense<0.000000e+00> : vector<1xf32>
    %17 = vector.multi_reduction <add>, %16, %cst_15 [0] : vector<8x1xf32> to vector<1xf32>
    %18 = vector.shape_cast %17 : vector<1xf32> to vector<1x1xf32>
    %cst_16 = arith.constant 1.250000e-01 : f32
    %19 = vector.broadcast %cst_16 : f32 to vector<1x1xf32>
    %20 = arith.mulf %18, %19 : vector<1x1xf32>
    %21 = arith.mulf %15, %15 : vector<1x1xf32>
    %22 = arith.subf %20, %21 : vector<1x1xf32>
    %cst_17 = arith.constant 0.000000e+00 : f32
    %23 = vector.broadcast %cst_17 : f32 to vector<1x1xf32>
    %24 = arith.maximumf %22, %23 : vector<1x1xf32>
    %cst_18 = arith.constant 9.99999974E-6 : f32
    %25 = vector.broadcast %cst_18 : f32 to vector<1x1xf32>
    %26 = arith.addf %24, %25 : vector<1x1xf32>
    %27 = math.rsqrt %26 : vector<1x1xf32>
    %28 = arith.mulf %10, %27 : vector<1x1xf32>
    %29 = arith.mulf %15, %28 : vector<1x1xf32>
    %30 = arith.subf %11, %29 : vector<1x1xf32>
    %31 = vector.broadcast %28 : vector<1x1xf32> to vector<8x1xf32>
    %32 = arith.mulf %1, %31 : vector<8x1xf32>
    %33 = vector.broadcast %30 : vector<1x1xf32> to vector<8x1xf32>
    %34 = arith.addf %32, %33 : vector<8x1xf32>
    %35 = arith.truncf %0 : vector<8x16xf32> to vector<8x16xbf16>
    %c0_19 = arith.constant 0 : index
    %c0_20 = arith.constant 0 : index
    %36 = vector.load %arg3[%c0_19, %c0_20] : memref<16x300xbf16, #tpu.memory_space<vmem>>, vector<16x300xbf16>
    %cst_21 = arith.constant dense<0.000000e+00> : vector<8x300xf32>
    %37 = tpu.matmul %35, %36, %cst_21 {dimension_numbers = #tpu.dot_dimension_numbers<[1], [0], [0], [1], [0, 0, 1, 1], [], []>} : vector<8x16xbf16>, vector<16x300xbf16>, vector<8x300xf32> -> vector<8x300xf32>
    %38 = vector.broadcast %34 : vector<8x1xf32> to vector<8x300xf32>
    %39 = vector.broadcast %2 : vector<1x300xf32> to vector<8x300xf32>
    %40 = arith.mulf %38, %39 : vector<8x300xf32>
    %41 = arith.addf %37, %40 : vector<8x300xf32>
    %cst_22 = arith.constant dense<0.000000e+00> : vector<300xf32>
    %42 = vector.multi_reduction <add>, %41, %cst_22 [0] : vector<8x300xf32> to vector<300xf32>
    %43 = vector.shape_cast %42 : vector<300xf32> to vector<1x300xf32>
    %cst_23 = arith.constant 1.250000e-01 : f32
    %44 = vector.broadcast %cst_23 : f32 to vector<1x300xf32>
    %45 = arith.mulf %43, %44 : vector<1x300xf32>
    %46 = arith.mulf %41, %41 : vector<8x300xf32>
    %cst_24 = arith.constant dense<0.000000e+00> : vector<300xf32>
    %47 = vector.multi_reduction <add>, %46, %cst_24 [0] : vector<8x300xf32> to vector<300xf32>
    %48 = vector.shape_cast %47 : vector<300xf32> to vector<1x300xf32>
    %cst_25 = arith.constant 1.250000e-01 : f32
    %49 = vector.broadcast %cst_25 : f32 to vector<1x300xf32>
    %50 = arith.mulf %48, %49 : vector<1x300xf32>
    %51 = arith.mulf %45, %45 : vector<1x300xf32>
    %52 = arith.subf %50, %51 : vector<1x300xf32>
    %cst_26 = arith.constant 0.000000e+00 : f32
    %53 = vector.broadcast %cst_26 : f32 to vector<1x300xf32>
    %54 = arith.maximumf %52, %53 : vector<1x300xf32>
    %cst_27 = arith.constant 9.99999974E-6 : f32
    %55 = vector.broadcast %cst_27 : f32 to vector<1x300xf32>
    %56 = arith.addf %54, %55 : vector<1x300xf32>
    %57 = math.rsqrt %56 : vector<1x300xf32>
    %58 = arith.mulf %3, %57 : vector<1x300xf32>
    %59 = arith.mulf %45, %58 : vector<1x300xf32>
    %60 = arith.subf %4, %59 : vector<1x300xf32>
    %61 = vector.broadcast %58 : vector<1x300xf32> to vector<8x300xf32>
    %62 = arith.mulf %41, %61 : vector<8x300xf32>
    %63 = vector.broadcast %60 : vector<1x300xf32> to vector<8x300xf32>
    %64 = arith.addf %62, %63 : vector<8x300xf32>
    %cst_28 = arith.constant 0.000000e+00 : f32
    %65 = vector.broadcast %cst_28 : f32 to vector<8x300xf32>
    %66 = arith.maximumf %64, %65 : vector<8x300xf32>
    %67 = arith.truncf %66 : vector<8x300xf32> to vector<8x300xbf16>
    %c0_29 = arith.constant 0 : index
    %c0_30 = arith.constant 0 : index
    %68 = vector.load %arg4[%c0_29, %c0_30] : memref<300x300xbf16, #tpu.memory_space<vmem>>, vector<300x300xbf16>
    %cst_31 = arith.constant dense<0.000000e+00> : vector<8x300xf32>
    %69 = tpu.matmul %67, %68, %cst_31 {dimension_numbers = #tpu.dot_dimension_numbers<[1], [0], [0], [1], [0, 0, 1, 1], [], []>} : vector<8x300xbf16>, vector<300x300xbf16>, vector<8x300xf32> -> vector<8x300xf32>
    %cst_32 = arith.constant dense<0.000000e+00> : vector<300xf32>
    %70 = vector.multi_reduction <add>, %69, %cst_32 [0] : vector<8x300xf32> to vector<300xf32>
    %71 = vector.shape_cast %70 : vector<300xf32> to vector<1x300xf32>
    %cst_33 = arith.constant 1.250000e-01 : f32
    %72 = vector.broadcast %cst_33 : f32 to vector<1x300xf32>
    %73 = arith.mulf %71, %72 : vector<1x300xf32>
    %74 = arith.mulf %69, %69 : vector<8x300xf32>
    %cst_34 = arith.constant dense<0.000000e+00> : vector<300xf32>
    %75 = vector.multi_reduction <add>, %74, %cst_34 [0] : vector<8x300xf32> to vector<300xf32>
    %76 = vector.shape_cast %75 : vector<300xf32> to vector<1x300xf32>
    %cst_35 = arith.constant 1.250000e-01 : f32
    %77 = vector.broadcast %cst_35 : f32 to vector<1x300xf32>
    %78 = arith.mulf %76, %77 : vector<1x300xf32>
    %79 = arith.mulf %73, %73 : vector<1x300xf32>
    %80 = arith.subf %78, %79 : vector<1x300xf32>
    %cst_36 = arith.constant 0.000000e+00 : f32
    %81 = vector.broadcast %cst_36 : f32 to vector<1x300xf32>
    %82 = arith.maximumf %80, %81 : vector<1x300xf32>
    %cst_37 = arith.constant 9.99999974E-6 : f32
    %83 = vector.broadcast %cst_37 : f32 to vector<1x300xf32>
    %84 = arith.addf %82, %83 : vector<1x300xf32>
    %85 = math.rsqrt %84 : vector<1x300xf32>
    %86 = arith.mulf %5, %85 : vector<1x300xf32>
    %87 = arith.mulf %73, %86 : vector<1x300xf32>
    %88 = arith.subf %6, %87 : vector<1x300xf32>
    %89 = vector.broadcast %86 : vector<1x300xf32> to vector<8x300xf32>
    %90 = arith.mulf %69, %89 : vector<8x300xf32>
    %91 = vector.broadcast %88 : vector<1x300xf32> to vector<8x300xf32>
    %92 = arith.addf %90, %91 : vector<8x300xf32>
    %cst_38 = arith.constant 0.000000e+00 : f32
    %93 = vector.broadcast %cst_38 : f32 to vector<8x300xf32>
    %94 = arith.maximumf %92, %93 : vector<8x300xf32>
    %95 = arith.truncf %94 : vector<8x300xf32> to vector<8x300xbf16>
    %c0_39 = arith.constant 0 : index
    %c0_40 = arith.constant 0 : index
    %96 = vector.load %arg5[%c0_39, %c0_40] : memref<300x300xbf16, #tpu.memory_space<vmem>>, vector<300x300xbf16>
    %cst_41 = arith.constant dense<0.000000e+00> : vector<8x300xf32>
    %97 = tpu.matmul %95, %96, %cst_41 {dimension_numbers = #tpu.dot_dimension_numbers<[1], [0], [0], [1], [0, 0, 1, 1], [], []>} : vector<8x300xbf16>, vector<300x300xbf16>, vector<8x300xf32> -> vector<8x300xf32>
    %cst_42 = arith.constant dense<0.000000e+00> : vector<300xf32>
    %98 = vector.multi_reduction <add>, %97, %cst_42 [0] : vector<8x300xf32> to vector<300xf32>
    %99 = vector.shape_cast %98 : vector<300xf32> to vector<1x300xf32>
    %cst_43 = arith.constant 1.250000e-01 : f32
    %100 = vector.broadcast %cst_43 : f32 to vector<1x300xf32>
    %101 = arith.mulf %99, %100 : vector<1x300xf32>
    %102 = arith.mulf %97, %97 : vector<8x300xf32>
    %cst_44 = arith.constant dense<0.000000e+00> : vector<300xf32>
    %103 = vector.multi_reduction <add>, %102, %cst_44 [0] : vector<8x300xf32> to vector<300xf32>
    %104 = vector.shape_cast %103 : vector<300xf32> to vector<1x300xf32>
    %cst_45 = arith.constant 1.250000e-01 : f32
    %105 = vector.broadcast %cst_45 : f32 to vector<1x300xf32>
    %106 = arith.mulf %104, %105 : vector<1x300xf32>
    %107 = arith.mulf %101, %101 : vector<1x300xf32>
    %108 = arith.subf %106, %107 : vector<1x300xf32>
    %cst_46 = arith.constant 0.000000e+00 : f32
    %109 = vector.broadcast %cst_46 : f32 to vector<1x300xf32>
    %110 = arith.maximumf %108, %109 : vector<1x300xf32>
    %cst_47 = arith.constant 9.99999974E-6 : f32
    %111 = vector.broadcast %cst_47 : f32 to vector<1x300xf32>
    %112 = arith.addf %110, %111 : vector<1x300xf32>
    %113 = math.rsqrt %112 : vector<1x300xf32>
    %114 = arith.mulf %7, %113 : vector<1x300xf32>
    %115 = arith.mulf %101, %114 : vector<1x300xf32>
    %116 = arith.subf %8, %115 : vector<1x300xf32>
    %117 = vector.broadcast %114 : vector<1x300xf32> to vector<8x300xf32>
    %118 = arith.mulf %97, %117 : vector<8x300xf32>
    %119 = vector.broadcast %116 : vector<1x300xf32> to vector<8x300xf32>
    %120 = arith.addf %118, %119 : vector<8x300xf32>
    %cst_48 = arith.constant 0.000000e+00 : f32
    %121 = vector.broadcast %cst_48 : f32 to vector<8x300xf32>
    %122 = arith.maximumf %120, %121 : vector<8x300xf32>
    %123 = arith.truncf %122 : vector<8x300xf32> to vector<8x300xbf16>
    %c0_49 = arith.constant 0 : index
    %c0_50 = arith.constant 0 : index
    %124 = vector.load %arg6[%c0_49, %c0_50] : memref<300x8xbf16, #tpu.memory_space<vmem>>, vector<300x8xbf16>
    %cst_51 = arith.constant dense<0.000000e+00> : vector<8x8xf32>
    %125 = tpu.matmul %123, %124, %cst_51 {dimension_numbers = #tpu.dot_dimension_numbers<[1], [0], [0], [1], [0, 0, 1, 1], [], []>} : vector<8x300xbf16>, vector<300x8xbf16>, vector<8x8xf32> -> vector<8x8xf32>
    %126 = vector.broadcast %9 : vector<1x8xf32> to vector<8x8xf32>
    %127 = arith.addf %125, %126 : vector<8x8xf32>
    %cst_52 = arith.constant dense<0xFF800000> : vector<8xf32>
    %128 = vector.multi_reduction <maximumf>, %127, %cst_52 [1] : vector<8x8xf32> to vector<8xf32>
    %129 = vector.shape_cast %128 : vector<8xf32> to vector<8x1xf32>
    %130 = vector.broadcast %129 : vector<8x1xf32> to vector<8x8xf32>
    %131 = arith.subf %127, %130 : vector<8x8xf32>
    %132 = math.exp %131 : vector<8x8xf32>
    %cst_53 = arith.constant dense<0.000000e+00> : vector<8xf32>
    %133 = vector.multi_reduction <add>, %132, %cst_53 [1] : vector<8x8xf32> to vector<8xf32>
    %134 = vector.shape_cast %133 : vector<8xf32> to vector<8x1xf32>
    %135 = tpu.reciprocal %134 {approx = true} : vector<8x1xf32> -> vector<8x1xf32>
    %136 = vector.broadcast %135 : vector<8x1xf32> to vector<8x8xf32>
    %137 = arith.mulf %132, %136 : vector<8x8xf32>
    %c0_54 = arith.constant 0 : index
    %c0_55 = arith.constant 0 : index
    %138 = vector.load %arg7[%c0_54, %c0_55] : memref<8x8xf32, #tpu.memory_space<vmem>>, vector<8x8xf32>
    tpu.vector_store %arg7[%c0_54, %c0_55], %137 {strides = array<i32>} : memref<8x8xf32, #tpu.memory_space<vmem>>, vector<8x8xf32>,
    return
  }
}

</mosaic_0001>

<bundles_post_ra>
// kernel: tpu_custom_call.1
= control target key start
LH: loop header
LB: loop body
LE: loop exit
PB: predicated region body
PF: predicated region fallthrough
CT: control target
= control target key end

     0   :  { %12 = vsyncpa [#allocation3], 0  ;;  %s2988_s0 = inlined_call_operand.vmem [shape: f32[8,16], index: 0, kind: input, shape index: {}]   ;;  %s2989_s1 = inlined_call_operand.vmem [shape: f32[8,1], index: 1, kind: input, shape index: {}]   ;;  %s2990_s2 = inlined_call_operand.vmem [shape: f32[10,384], index: 2, kind: input, shape index: {}]   ;;  %s2991_s3 = inlined_call_operand.vmem [shape: bf16[16,300], index: 3, kind: input, shape index: {}]   ;;  %s2992_s4 = inlined_call_operand.hbm [shape: bf16[300,300], index: 4, kind: input, shape index: {}]   ;;  %s2993_s5 = inlined_call_operand.hbm [shape: bf16[300,300], index: 5, kind: input, shape index: {}]   ;;  %s2994_s6 = inlined_call_operand.vmem [shape: bf16[300,8], index: 6, kind: input, shape index: {}]   ;;  %s2995_s7 = inlined_call_operand.hbm [shape: f32[8,8], index: 7, kind: output, shape index: {}]  }
   0x1   :  { %13 = vsyncpa [#allocation6], 0 }
   0x2   :  { %14 = vsyncpa [#allocation4], 0  ;;  %s2651_s24 = smov [#allocation2]   ;;  %s2579_s28 = scalar_lea.hbm %s2992_s4, 7296 }
   0x3   :  { %s28_s25 = sshll.u32 %s2651_s24, 4  ;;  %p2580_p0 = scmp.ne.s32.totalorder %s2992_s4, %s2579_s28  ;;  %s29_s25 = int_to_ptr.vmem [resolvable:$true] %s28_s25 }
   0x4   :  { %p2583_p1 = scmp.lt.u32.totalorder %s2579_s28, %s2992_s4 }
   0x6   :  { %p2585_p2 = pnand %p2583_p1, %p2580_p0 }
   0x8   :  { %2588 = shalt.err (!%p2585_p2)
}
   0x9   :  { %s2589_s10 = scalar_lea.vmem %s29_s25, 7296  ;;  %p2594_p4 = scmp.lt.s32.totalorder %s29_s25, %s29_s25 }
   0xa   :  { %p2590_p3 = scmp.ne.s32.totalorder %s29_s25, %s2589_s10  ;;  %p2595_p5 = scmp.lt.s32.totalorder %s2589_s10, %s2589_s10 }
   0xc   :  { %p2596_p6 = por %p2595_p5, %p2594_p4 }
   0xe   :  { %p2597_p7 = pnand %p2596_p6, %p2590_p3 }
  0x10   :  { %2600 = shalt.err (!%p2597_p7)
}
  0x11   :  { %s2652_s11 = smov 192   ;;  %s2653_s12 = smov 12  }
  0x12   :  { %34 = dma.hbm_to_vmem [thread:$0]  %s2992_s4, 7296, %s29_s25, [#allocation3], %s2652_s11, %s2652_s11, %s2653_s12  }
  0x13   :  { %s2654_s15 = smov [#allocation5]   ;;  %s2601_s19 = scalar_lea.hbm %s2993_s5, 7296 }
  0x14   :  { %s40_s16 = sshll.u32 %s2654_s15, 4  ;;  %p2602_p8 = scmp.ne.s32.totalorder %s2993_s5, %s2601_s19  ;;  %s41_s16 = int_to_ptr.vmem [resolvable:$true] %s40_s16 }
  0x15   :  { %p2605_p9 = scmp.lt.u32.totalorder %s2601_s19, %s2993_s5 }
  0x17   :  { %p2607_p10 = pnand %p2605_p9, %p2602_p8 }
  0x19   :  { %2610 = shalt.err (!%p2607_p10)
}
  0x1a   :  { %s2611_s24 = scalar_lea.vmem %s41_s16, 7296  ;;  %p2616_p12 = scmp.lt.s32.totalorder %s41_s16, %s41_s16 }
  0x1b   :  { %p2612_p11 = scmp.ne.s32.totalorder %s41_s16, %s2611_s24  ;;  %p2617_p13 = scmp.lt.s32.totalorder %s2611_s24, %s2611_s24 }
  0x1d   :  { %p2618_p0 = por %p2617_p13, %p2616_p12 }
  0x1f   :  { %p2619_p1 = pnand %p2618_p0, %p2612_p11 }
  0x21   :  { %2622 = shalt.err (!%p2619_p1)
}
  0x22   :  { %46 = dma.hbm_to_vmem [thread:$0]  %s2993_s5, 7296, %s41_s16, [#allocation6], %s2652_s11, %s2652_s11, %s2653_s12  }
  0x23   :  { %2645 = dma.done.wait [#allocation3], 7296  }
  0x24   :  { %2646 = vsyncadd [#allocation3], 4294960000 }
  0x25   :  { %2647 = dma.done.wait [#allocation6], 7296  }
  0x26   :  { %2648 = vsyncadd [#allocation6], 4294960000  ;;  %v2655_v0 = vmov 0.0   ;;  %vm2656_vm0 = vmmov 0   ;;  %v2657_v1 = vmov 0   ;;  %vm74_vm1 = vcmask 7168  }
  0x27   :  { %2328 = vmatprep.subr.bf16.mxu1 %v2655_v0  ;;  %2330 = vmatprep.mubr.msk.bf16.mxu1 %vm2656_vm0, %v2655_v0  ;;  %v2380_v2 = vld [vmem:[%s2991_s3 + $0x4] ss:$12 sps:$4 sm:$0xff]   ;;  %v2382_v3 = vld [vmem:[%s2991_s3 + $0x8] ss:$12 sps:$4 sm:$0xff]   ;;  %v2383_v4 = vld [vmem:[%s2991_s3] ss:$12 sps:$4 sm:$0xff]  }
  0x28   :  { %183 = vmatprep.mubr.bf16.mxu0 %v2657_v1  ;;  %2379 = vset.pattern.permute.xlu0 %v2657_v1  ;;  %v56_v5 = vld [vmem:[%s2988_s0] sm:$0xff]  ;;  %vm147_vm2 = vcmask 130048   ;;  %v72_v29 = vld [vmem:[%s2990_s2 + $0x18] ss:$0 sm:$0xff]  ;;  %v73_v31 = vld [vmem:[%s2990_s2 + $0x19] ss:$0 sm:$0xff] }
  0x29   :  { %151 = vmatprep.subr.bf16.mxu0 %v2380_v2  ;;  %v57_v6 = vld [vmem:[%s2989_s1] sm:$0xff]  ;;  %2329 = vmatpush3.bf16.msra.mxu1 %v2382_v3  ;;  %v102_v7 = vpack.c.bf16 %v56_v5, %v56_v5  ;;  %v2389_v39 = vld [vmem:[#allocation2 + $0x1c] ss:$12 sps:$4 sm:$0xff]   ;;  %v2395_v43 = vld [vmem:[#allocation2 + $0x4c] ss:$12 sps:$4 sm:$0xff]   ;;  %vm778_vm3 = vcmask 1045504  }
  0x2a   :  { %v75_v8 = vsel %vm74_vm1, %v57_v6, 0.0  ;;  %v83_v9 = vmul.f32 %v57_v6, %v57_v6  ;;  %152 = vmatpush1.bf16.msra.mxu0 %v2383_v4  ;;  %v2386_v37 = vld [vmem:[#allocation2 + $0x4] ss:$12 sps:$4 sm:$0xff]   ;;  %v2384_v38 = vld [vmem:[#allocation2] ss:$12 sps:$4 sm:$0xff]   ;;  %vm244_vm4 = vcmask 359424  }
  0x2b   :  { %v76_v10 = vrot.slane %v75_v8, 4  ;;  %788 = vmatprep.subr.bf16.mxu0 %v2386_v37  ;;  %v2387_v40 = vld [vmem:[#allocation2 + $0x18] ss:$12 sps:$4 sm:$0xff]   ;;  %v2392_v41 = vld [vmem:[#allocation2 + $0x34] ss:$12 sps:$4 sm:$0xff]   ;;  %vm2068_vm5 = vcmask 64512  }
  0x2c   :  { %v84_v11 = vsel %vm74_vm1, %v83_v9, 0.0  ;;  %2331 = vmatmul.mubr.msk.bf16.vlgmr.msra.gmra.mrb[0].mxu1 %vm147_vm2, %v102_v7  ;;  %v2390_v42 = vld [vmem:[#allocation2 + $0x30] ss:$12 sps:$4 sm:$0xff]   ;;  %v2393_v44 = vld [vmem:[#allocation2 + $0x48] ss:$12 sps:$4 sm:$0xff]  }
  0x2d   :  { %v77_v12 = vadd.f32 %v76_v10, %v75_v8  ;;  %v85_v13 = vrot.slane %v84_v11, 4  ;;  %2106 = vmatmul.mubr.msk.bf16.vlgmr.msra.gmra.mrb[0].mxu0 %vm147_vm2, %v102_v7  ;;  %861 = vmatprep.mubr.bf16.mxu1 %v2657_v1  ;;  %v2398_v45 = vld [vmem:[#allocation2 + $0x64] ss:$12 sps:$4 sm:$0xff]   ;;  %v2396_v46 = vld [vmem:[#allocation2 + $0x60] ss:$12 sps:$4 sm:$0xff]  }
  0x2e   :  { %789 = vmatpush1.bf16.msra.mxu0 %v2384_v38  ;;  %v2401_v47 = vld [vmem:[#allocation2 + $0x7c] ss:$12 sps:$4 sm:$0xff]   ;;  %v2399_v48 = vld [vmem:[#allocation2 + $0x78] ss:$12 sps:$4 sm:$0xff]   ;;  %v2404_v49 = vld [vmem:[#allocation2 + $0x94] ss:$12 sps:$4 sm:$0xff]  }
  0x2f   :  { %v78_v14 = vrot.slane %v77_v12, 2  ;;  %v86_v15 = vadd.f32 %v85_v13, %v84_v11  ;;  %790 = vmatprep.subr.bf16.mxu0 %v2389_v39  ;;  %v2402_v50 = vld [vmem:[#allocation2 + $0x90] ss:$12 sps:$4 sm:$0xff]   ;;  %v2407_v51 = vld [vmem:[#allocation2 + $0xac] ss:$12 sps:$4 sm:$0xff]  }
  0x30   :  { %v2423_v52 = vld [vmem:[#allocation2 + $0x180] ss:$12 sps:$4 sm:$0xff]   ;;  %v2425_v53 = vld [vmem:[#allocation2 + $0x184] ss:$12 sps:$4 sm:$0xff]   ;;  %v2405_v54 = vld [vmem:[#allocation2 + $0xa8] ss:$12 sps:$4 sm:$0xff]  }
  0x31   :  { %v79_v16 = vadd.f32 %v78_v14, %v77_v12  ;;  %v87_v17 = vrot.slane %v86_v15, 2  ;;  %v2431_v55 = vld [vmem:[#allocation2 + $0x19c] ss:$12 sps:$4 sm:$0xff]   ;;  %v2410_v56 = vld [vmem:[#allocation2 + $0xc4] ss:$12 sps:$4 sm:$0xff]   ;;  %829 = vmatprep.subr.bf16.mxu1 %v2425_v53 }
  0x32   :  { %791 = vmatpush1.bf16.msra.mxu0 %v2387_v40  ;;  %830 = vmatpush1.bf16.msra.mxu1 %v2423_v52  ;;  %v2429_v57 = vld [vmem:[#allocation2 + $0x198] ss:$12 sps:$4 sm:$0xff]   ;;  %v2435_v58 = vld [vmem:[#allocation2 + $0x1b4] ss:$12 sps:$4 sm:$0x3f]  }
  0x33   :  { %v80_v18 = vrot.slane %v79_v16, 1  ;;  %v88_v19 = vadd.f32 %v87_v17, %v86_v15  ;;  %792 = vmatprep.subr.bf16.mxu0 %v2392_v41  ;;  %831 = vmatprep.subr.bf16.mxu1 %v2431_v55  ;;  %v2437_v59 = vld [vmem:[#allocation2 + $0x1b0] ss:$12 sps:$4 sm:$0x3f]   ;;  %v2408_v60 = vld [vmem:[#allocation2 + $0xc0] ss:$12 sps:$4 sm:$0xff]   ;;  %v113_v15 = vlaneseq }
  0x34   :  { %v2413_v61 = vld [vmem:[#allocation2 + $0xdc] ss:$12 sps:$4 sm:$0xff]   ;;  %v780_v62 = vsel %vm778_vm3, %v2437_v59, 0  ;;  %v2411_v2 = vld [vmem:[#allocation2 + $0xd8] ss:$12 sps:$4 sm:$0xff]  }
  0x35   :  { %v81_v20 = vadd.f32 %v80_v18, %v79_v16  ;;  %v89_v21 = vrot.slane %v88_v19, 1  ;;  %v2441_v63 = vld [vmem:[#allocation2 + $0xc8] ss:$12 sps:$4 sm:$0xff]   ;;  %v2414_v4 = vld [vmem:[#allocation2 + $0xf0] ss:$12 sps:$4 sm:$0xff]   ;;  %v2753_v16 = vshrl.u32 %v113_v15, 7 }
  0x36   :  { %793 = vmatpush1.bf16.msra.mxu0 %v2390_v42  ;;  %832 = vmatpush1.bf16.msra.mxu1 %v2429_v57  ;;  %v2416_v3 = vld [vmem:[#allocation2 + $0xf4] ss:$12 sps:$4 sm:$0xff]   ;;  %v2419_v5 = vld [vmem:[#allocation2 + $0x10c] ss:$12 sps:$4 sm:$0xff]   ;;  %v2422_v7 = vld [vmem:[#allocation2 + $0x124] ss:$12 sps:$4 sm:$0xff]  }
  0x37   :  { %v82_v22 = vmul.f32 0.125, %v81_v20  ;;  %v90_v23 = vadd.f32 %v89_v21, %v88_v19  ;;  %794 = vmatprep.subr.bf16.mxu0 %v2395_v43  ;;  %2165 = vmatprep.subr.msk.bf16.mxu1 %vm778_vm3, %v2435_v58  ;;  %v2420_v8 = vld [vmem:[#allocation2 + $0x120] ss:$12 sps:$4 sm:$0xff]   ;;  %v2428_v9 = vld [vmem:[#allocation2 + $0x13c] ss:$12 sps:$4 sm:$0xff]   ;;  %v2756_v17 = vsub.s32 2, %v2753_v16 }
  0x38   :  { %v2426_v10 = vld [vmem:[#allocation2 + $0x138] ss:$12 sps:$4 sm:$0xff]   ;;  %v2434_v11 = vld [vmem:[#allocation2 + $0x154] ss:$12 sps:$4 sm:$0xff]   ;;  %v2432_v12 = vld [vmem:[#allocation2 + $0x150] ss:$12 sps:$4 sm:$0xff]  }
  0x39   :  { %v91_v24 = vmul.f32 0.125, %v90_v23  ;;  %v92_v25 = vmul.f32 %v82_v22, %v82_v22  ;;  %v2440_v13 = vld [vmem:[#allocation2 + $0x16c] ss:$12 sps:$4 sm:$0xff]   ;;  %v2438_v14 = vld [vmem:[#allocation2 + $0x168] ss:$12 sps:$4 sm:$0xff]   ;;  %v2762_v19 = vsub.s32 0, %v2753_v16 }
  0x3a   :  { %795 = vmatpush1.bf16.msra.mxu0 %v2393_v44  ;;  %834 = vmatpush1.bf16.msra.mxu1 %v780_v62  ;;  %v58_v18 = vld [vmem:[%s2990_s2] ss:$8 sm:$0x7]  ;;  %v2765_v20 = vsub.s32 1, %v2753_v16 }
  0x3b   :  { %v93_v26 = vsub.f32 %v91_v24, %v92_v25  ;;  %796 = vmatprep.subr.bf16.mxu0 %v2398_v45  ;;  %2250 = vmatprep.subr.bf16.mxu1 %v2441_v63  ;;  %v124_v21 = vrot.slane %v58_v18, %v2756_v17  ;;  %v116_v23 = vrot.slane %v58_v18, %v2762_v19 }
  0x3c   :  { %v120_v24 = vrot.slane %v58_v18, %v2765_v20 }
  0x3d   :  { %v94_v27 = vmax.f32 %v93_v26, 0.0 }
  0x3e   :  { %797 = vmatpush1.bf16.msra.mxu0 %v2396_v46 }
  0x3f   :  { %v95_v28 = vadd.f32 1e-05, %v94_v27  ;;  %798 = vmatprep.subr.bf16.mxu0 %v2401_v47 }
  0x41   :  { %2555 = vrsqrt.f32 %v95_v28 }
  0x42   :  { %799 = vmatpush1.bf16.msra.mxu0 %v2399_v48 }
  0x43   :  { %800 = vmatprep.subr.bf16.mxu0 %v2404_v49 }
  0x46   :  { %801 = vmatpush1.bf16.msra.mxu0 %v2402_v50 }
  0x47   :  { %802 = vmatprep.subr.bf16.mxu0 %v2407_v51 }
  0x4a   :  { %803 = vmatpush1.bf16.msra.mxu0 %v2405_v54 }
  0x4b   :  { %v2556_v30 = vpop.eup %2555  ;;  %804 = vmatprep.subr.bf16.mxu0 %v2410_v56 }
  0x4c   :  { %v97_v32 = vmul.f32 %v2556_v30, %v72_v29 }
  0x4e   :  { %v98_v33 = vmul.f32 %v97_v32, %v82_v22  ;;  %v100_v34 = vmul.f32 %v97_v32, %v57_v6  ;;  %805 = vmatpush1.bf16.msra.mxu0 %v2408_v60  ;;  %v2417_v6 = vld [vmem:[#allocation2 + $0x108] ss:$12 sps:$4 sm:$0xff]  }
  0x4f   :  { %806 = vmatprep.subr.bf16.mxu0 %v2413_v61 }
  0x50   :  { %v99_v35 = vsub.f32 %v73_v31, %v98_v33 }
  0x52   :  { %v101_v36 = vadd.f32 %v100_v34, %v99_v35  ;;  %807 = vmatpush1.bf16.msra.mxu0 %v2411_v2 }
  0x53   :  { %808 = vmatprep.subr.bf16.mxu0 %v2416_v3 }
  0x54   :  { %109 = vperm.xlu0 %2379, %v101_v36  }
  0x56   :  { %809 = vmatpush1.bf16.msra.mxu0 %v2414_v4 }
  0x57   :  { %810 = vmatprep.subr.bf16.mxu0 %v2419_v5 }
  0x5a   :  { %811 = vmatpush1.bf16.msra.mxu0 %v2417_v6 }
  0x5b   :  { %812 = vmatprep.subr.bf16.mxu0 %v2422_v7 }
  0x5e   :  { %813 = vmatpush1.bf16.msra.mxu0 %v2420_v8 }
  0x5f   :  { %814 = vmatprep.subr.bf16.mxu0 %v2428_v9 }
  0x62   :  { %815 = vmatpush1.bf16.msra.mxu0 %v2426_v10 }
  0x63   :  { %816 = vmatprep.subr.bf16.mxu0 %v2434_v11 }
  0x66   :  { %817 = vmatpush1.bf16.msra.mxu0 %v2432_v12 }
  0x67   :  { %818 = vmatprep.subr.bf16.mxu0 %v2440_v13 }
  0x6a   :  { %819 = vmatpush1.bf16.msra.mxu0 %v2438_v14 }
  0xd3   :  { %v110_v22 = vpop.permute.xlu0 %109 }
  0xd4   :  { %v130_v25 = vmul.f32 %v124_v21, %v110_v22  ;;  %v128_v26 = vmul.f32 %v116_v23, %v110_v22  ;;  %v129_v27 = vmul.f32 %v120_v24, %v110_v22 }
  0xff   :  { %v226_v28 = vpop.f32.mrb[0].mxu1 }
 0x100   :  { %v2770_v29 = vadd.f32 %v226_v28, %v130_v25  ;;  %v185_v30 = vpop.f32.mrb[0].mxu0  ;;  %v2332_v31 = vpop.f32.mrb[1].mxu1 }
 0x101   :  { %v2772_v32 = vadd.f32 %v185_v30, %v128_v26  ;;  %v187_v33 = vpop.f32.mrb[1].mxu0  ;;  %v229_v34 = vpop.f32.mrb[2].mxu1 }
 0x102   :  { %v245_v35 = vsel %vm244_vm4, %v2770_v29, 0.0  ;;  %v257_v36 = vmul.f32 %v2770_v29, %v2770_v29  ;;  %v2778_v37 = vadd.f32 %v187_v33, %v129_v27  ;;  %v189_v38 = vpop.f32.mrb[2].mxu0  ;;  %v2333_v39 = vpop.f32.mrb[3].mxu1 }
 0x103   :  { %v246_v40 = vrot.slane %v245_v35, 4  ;;  %v232_v41 = vrot.slane %v2772_v32, 4  ;;  %v255_v42 = vmul.f32 %v2772_v32, %v2772_v32  ;;  %v190_v43 = vpop.f32.mrb[3].mxu0 }
 0x104   :  { %v270_v44 = vsel %vm244_vm4, %v257_v36, 0.0  ;;  %v238_v45 = vrot.slane %v2778_v37, 4  ;;  %v256_v46 = vmul.f32 %v2778_v37, %v2778_v37  ;;  %v2658_v43 = vmov 1966171168  }
 0x105   :  { %v247_v47 = vadd.f32 %v246_v40, %v245_v35  ;;  %v271_v48 = vrot.slane %v270_v44, 4  ;;  %v233_v49 = vadd.f32 %v232_v41, %v2772_v32  ;;  %v258_v50 = vrot.slane %v255_v42, 4 }
 0x106   :  { %v239_v51 = vadd.f32 %v238_v45, %v2778_v37  ;;  %v264_v52 = vrot.slane %v256_v46, 4 }
 0x107   :  { %v248_v53 = vrot.slane %v247_v47, 2  ;;  %v272_v54 = vadd.f32 %v271_v48, %v270_v44  ;;  %v234_v55 = vrot.slane %v233_v49, 2  ;;  %v259_v56 = vadd.f32 %v258_v50, %v255_v42 }
 0x108   :  { %v240_v57 = vrot.slane %v239_v51, 2  ;;  %v265_v58 = vadd.f32 %v264_v52, %v256_v46  ;;  %v300_v44 = vunpack.c.l.s4 %v2658_v43  ;;  %v2459_v43 = vld [vmem:[#allocation2 + $0x1b8] ss:$12 sps:$4 sm:$0x3f]  }
 0x109   :  { %v249_v59 = vadd.f32 %v248_v53, %v247_v47  ;;  %v273_v60 = vrot.slane %v272_v54, 2  ;;  %v235_v61 = vadd.f32 %v234_v55, %v233_v49  ;;  %v260_v62 = vrot.slane %v259_v56, 2 }
 0x10a   :  { %v241_v63 = vadd.f32 %v240_v57, %v239_v51  ;;  %v266_v2 = vrot.slane %v265_v58, 2  ;;  %v301_v45 = vunpack.c.0.s8 %v300_v44  ;;  %v786_v44 = vsel %vm778_vm3, %v2459_v43, 0 }
 0x10b   :  { %v250_v3 = vrot.slane %v249_v59, 1  ;;  %v274_v4 = vadd.f32 %v273_v60, %v272_v54  ;;  %v236_v5 = vrot.slane %v235_v61, 1  ;;  %v261_v6 = vadd.f32 %v260_v62, %v259_v56  ;;  %v2097_v54 = vld [vmem:[%s2990_s2 + $0x1] ss:$8 sm:$0x7] }
 0x10c   :  { %v242_v7 = vrot.slane %v241_v63, 1  ;;  %v267_v8 = vadd.f32 %v266_v2, %v265_v58  ;;  %v2790_v48 = vsub.s32 %v301_v45, %v2753_v16  ;;  %v2462_v45 = vld [vmem:[#allocation5 + $0x4] ss:$12 sps:$4 sm:$0xff]  }
 0x10d   :  { %v251_v9 = vadd.f32 %v250_v3, %v249_v59  ;;  %v275_v10 = vrot.slane %v274_v4, 1  ;;  %v237_v11 = vadd.f32 %v236_v5, %v235_v61  ;;  %v262_v12 = vrot.slane %v261_v6, 1 }
 0x10e   :  { %v243_v13 = vadd.f32 %v242_v7, %v241_v63  ;;  %v268_v14 = vrot.slane %v267_v8, 1  ;;  %v2098_v7 = vld [vmem:[%s2990_s2 + $0x2] ss:$8 sm:$0x7] }
 0x10f   :  { %v254_v15 = vmul.f32 0.125, %v251_v9  ;;  %v276_v18 = vadd.f32 %v275_v10, %v274_v4  ;;  %v252_v21 = vmul.f32 0.125, %v237_v11  ;;  %v263_v22 = vadd.f32 %v262_v12, %v261_v6 }
 0x110   :  { %v269_v23 = vadd.f32 %v268_v14, %v267_v8  ;;  %v253_v24 = vmul.f32 0.125, %v243_v13 }
 0x111   :  { %v279_v25 = vmul.f32 0.125, %v276_v18  ;;  %v282_v26 = vmul.f32 %v254_v15, %v254_v15  ;;  %v277_v27 = vmul.f32 0.125, %v263_v22  ;;  %v280_v28 = vmul.f32 %v252_v21, %v252_v21  ;;  %v2442_v18 = vld [vmem:[#allocation2 + $0x8] ss:$12 sps:$4 sm:$0xff]  }
 0x112   :  { %v278_v30 = vmul.f32 0.125, %v269_v23  ;;  %v281_v31 = vmul.f32 %v253_v24, %v253_v24 }
 0x113   :  { %v285_v33 = vsub.f32 %v279_v25, %v282_v26  ;;  %v283_v34 = vsub.f32 %v277_v27, %v280_v28  ;;  %v2444_v25 = vld [vmem:[#allocation2 + $0x20] ss:$12 sps:$4 sm:$0xff]   ;;  %v2445_v26 = vld [vmem:[#allocation2 + $0xf8] ss:$12 sps:$4 sm:$0xff]   ;;  %v2447_v28 = vld [vmem:[#allocation2 + $0x110] ss:$12 sps:$4 sm:$0xff]  }
 0x114   :  { %v284_v35 = vsub.f32 %v278_v30, %v281_v31  ;;  %v2446_v27 = vld [vmem:[#allocation2 + $0x38] ss:$12 sps:$4 sm:$0xff]   ;;  %v2448_v30 = vld [vmem:[#allocation2 + $0x50] ss:$12 sps:$4 sm:$0xff]   ;;  %v2449_v31 = vld [vmem:[#allocation2 + $0x128] ss:$12 sps:$4 sm:$0xff]  }
 0x115   :  { %v288_v36 = vmax.f32 %v285_v33, 0.0  ;;  %v286_v38 = vmax.f32 %v283_v34, 0.0  ;;  %v2450_v33 = vld [vmem:[#allocation2 + $0x68] ss:$12 sps:$4 sm:$0xff]   ;;  %v2451_v34 = vld [vmem:[#allocation2 + $0x140] ss:$12 sps:$4 sm:$0xff]  }
 0x116   :  { %v287_v39 = vmax.f32 %v284_v35, 0.0  ;;  %v2452_v35 = vld [vmem:[#allocation2 + $0x80] ss:$12 sps:$4 sm:$0xff]  }
 0x117   :  { %v291_v40 = vadd.f32 1e-05, %v288_v36  ;;  %v289_v41 = vadd.f32 1e-05, %v286_v38  ;;  %v2453_v36 = vld [vmem:[#allocation2 + $0x158] ss:$12 sps:$4 sm:$0xff]  }
 0x118   :  { %v290_v42 = vadd.f32 1e-05, %v287_v39  ;;  %v2454_v38 = vld [vmem:[#allocation2 + $0x98] ss:$12 sps:$4 sm:$0xff]   ;;  %v2455_v39 = vld [vmem:[#allocation2 + $0x170] ss:$12 sps:$4 sm:$0xff]  }
 0x119   :  { %2557 = vrsqrt.f32 %v291_v40  ;;  %v2456_v40 = vld [vmem:[#allocation2 + $0xb0] ss:$12 sps:$4 sm:$0xff]  }
 0x11a   :  { %2559 = vrsqrt.f32 %v289_v41  ;;  %v2457_v41 = vld [vmem:[#allocation2 + $0x188] ss:$12 sps:$4 sm:$0xff]  }
 0x11b   :  { %2561 = vrsqrt.f32 %v290_v42  ;;  %v2458_v42 = vld [vmem:[#allocation2 + $0x1a0] ss:$12 sps:$4 sm:$0xff]  }
 0x123   :  { %v2558_v46 = vpop.eup %2557 }
 0x124   :  { %v2560_v47 = vpop.eup %2559  ;;  %v312_v52 = vrot.slane %v2558_v46, %v2790_v48  ;;  %v2460_v46 = vld [vmem:[#allocation5] ss:$12 sps:$4 sm:$0xff]  }
 0x125   :  { %v2562_v49 = vpop.eup %2561 }
 0x126   :  { %v298_v50 = vcombine.low %v2560_v47, %v2562_v49  ;;  %v2465_v47 = vld [vmem:[#allocation5 + $0x1c] ss:$12 sps:$4 sm:$0xff]   ;;  %v2463_v49 = vld [vmem:[#allocation5 + $0x18] ss:$12 sps:$4 sm:$0xff]  }
 0x128   :  { %v305_v51 = vrot.slane %v298_v50, %v2790_v48  ;;  %v2468_v50 = vld [vmem:[#allocation5 + $0x34] ss:$12 sps:$4 sm:$0xff]  }
 0x12a   :  { %v313_v53 = vcombine.low %v305_v51, %v312_v52  ;;  %v2466_v51 = vld [vmem:[#allocation5 + $0x30] ss:$12 sps:$4 sm:$0xff]   ;;  %v2471_v52 = vld [vmem:[#allocation5 + $0x4c] ss:$12 sps:$4 sm:$0xff]  }
 0x12c   :  { %v320_v55 = vrot.slane %v313_v53, %v2790_v48  ;;  %v2469_v53 = vld [vmem:[#allocation5 + $0x48] ss:$12 sps:$4 sm:$0xff]  }
 0x12e   :  { %v322_v56 = vmul.f32 %v2097_v54, %v320_v55  ;;  %v2474_v54 = vld [vmem:[#allocation5 + $0x64] ss:$12 sps:$4 sm:$0xff]   ;;  %v2472_v55 = vld [vmem:[#allocation5 + $0x60] ss:$12 sps:$4 sm:$0xff]  }
 0x130   :  { %v327_v57 = vrot.slane %v322_v56, %v2762_v19  ;;  %v331_v58 = vrot.slane %v322_v56, %v2765_v20  ;;  %v335_v16 = vrot.slane %v322_v56, %v2756_v17  ;;  %v2477_v56 = vld [vmem:[#allocation5 + $0x7c] ss:$12 sps:$4 sm:$0xff]  }
 0x132   :  { %v339_v59 = vmul.f32 %v327_v57, %v252_v21  ;;  %v340_v60 = vmul.f32 %v331_v58, %v253_v24  ;;  %v341_v61 = vmul.f32 %v335_v16, %v254_v15  ;;  %v371_v62 = vmul.f32 %v331_v58, %v2778_v37  ;;  %v2443_v24 = vld [vmem:[#allocation2 + $0xe0] ss:$12 sps:$4 sm:$0xff]   ;;  %v2480_v58 = vld [vmem:[#allocation5 + $0x94] ss:$12 sps:$4 sm:$0xff]  }
 0x133   :  { %v372_v63 = vmul.f32 %v335_v16, %v2770_v29  ;;  %v370_v2 = vmul.f32 %v327_v57, %v2772_v32  ;;  %v2475_v57 = vld [vmem:[#allocation5 + $0x78] ss:$12 sps:$4 sm:$0xff]   ;;  %v2478_v16 = vld [vmem:[#allocation5 + $0x90] ss:$12 sps:$4 sm:$0xff]  }
 0x134   :  { %v345_v3 = vcombine.low %v339_v59, %v340_v60  ;;  %v359_v5 = vrot.slane %v341_v61, %v2790_v48  ;;  %v2483_v59 = vld [vmem:[#allocation5 + $0xac] ss:$12 sps:$4 sm:$0xff]   ;;  %v2481_v60 = vld [vmem:[#allocation5 + $0xa8] ss:$12 sps:$4 sm:$0xff]  }
 0x135   :  { %v2487_v61 = vld [vmem:[#allocation5 + $0xc8] ss:$12 sps:$4 sm:$0xff]  }
 0x136   :  { %v352_v4 = vrot.slane %v345_v3, %v2790_v48  ;;  %2276 = vmatprep.subr.bf16.mxu0 %v2487_v61  ;;  %v2492_v3 = vld [vmem:[#allocation5 + $0xe0] ss:$12 sps:$4 sm:$0xff]  }
 0x138   :  { %v360_v6 = vcombine.low %v352_v4, %v359_v5  ;;  %v2491_v4 = vld [vmem:[#allocation5 + $0xdc] ss:$12 sps:$4 sm:$0xff]   ;;  %v2493_v5 = vld [vmem:[#allocation5 + $0x20] ss:$12 sps:$4 sm:$0xff]  }
 0x13a   :  { %v367_v8 = vrot.slane %v360_v6, %v2790_v48  ;;  %v2489_v6 = vld [vmem:[#allocation5 + $0xd8] ss:$12 sps:$4 sm:$0xff]  }
 0x13c   :  { %v369_v9 = vsub.f32 %v2098_v7, %v367_v8  ;;  %v2497_v7 = vld [vmem:[#allocation5 + $0xf8] ss:$12 sps:$4 sm:$0xff]   ;;  %v2496_v8 = vld [vmem:[#allocation5 + $0xf4] ss:$12 sps:$4 sm:$0xff]  }
 0x13e   :  { %v381_v10 = vrot.slane %v369_v9, %v2765_v20  ;;  %v385_v37 = vrot.slane %v369_v9, %v2756_v17  ;;  %v377_v29 = vrot.slane %v369_v9, %v2762_v19  ;;  %v2498_v9 = vld [vmem:[#allocation5 + $0x38] ss:$12 sps:$4 sm:$0xff]  }
 0x140   :  { %v390_v32 = vadd.f32 %v381_v10, %v371_v62  ;;  %v391_v11 = vadd.f32 %v385_v37, %v372_v63  ;;  %v389_v12 = vadd.f32 %v377_v29, %v370_v2  ;;  %v2486_v62 = vld [vmem:[#allocation5 + $0xc4] ss:$12 sps:$4 sm:$0xff]   ;;  %v2488_v63 = vld [vmem:[#allocation5 + $0x8] ss:$12 sps:$4 sm:$0xff]   ;;  %v2484_v2 = vld [vmem:[#allocation5 + $0xc0] ss:$12 sps:$4 sm:$0xff]  }
 0x141   :  { %v2494_v10 = vld [vmem:[#allocation5 + $0xf0] ss:$12 sps:$4 sm:$0xff]   ;;  %v2501_v29 = vld [vmem:[#allocation5 + $0x10c] ss:$12 sps:$4 sm:$0xff]  }
 0x142   :  { %v393_v13 = vmax.f32 %v390_v32, 0.0  ;;  %v394_v14 = vmax.f32 %v391_v11, 0.0  ;;  %v392_v15 = vmax.f32 %v389_v12, 0.0  ;;  %v2502_v37 = vld [vmem:[#allocation5 + $0x110] ss:$12 sps:$4 sm:$0xff]  }
 0x143   :  { %v2503_v32 = vld [vmem:[#allocation5 + $0x50] ss:$12 sps:$4 sm:$0xff]   ;;  %v2499_v11 = vld [vmem:[#allocation5 + $0x108] ss:$12 sps:$4 sm:$0xff]  }
 0x144   :  { %v396_v21 = vpack.c.bf16 %v393_v13, %v393_v13  ;;  %v397_v22 = vpack.c.bf16 %v394_v14, %v394_v14  ;;  %v395_v23 = vpack.c.bf16 %v392_v15, %v392_v15  ;;  %v2507_v12 = vld [vmem:[#allocation5 + $0x128] ss:$12 sps:$4 sm:$0xff]   ;;  %v2506_v13 = vld [vmem:[#allocation5 + $0x124] ss:$12 sps:$4 sm:$0xff]   ;;  %v2504_v15 = vld [vmem:[#allocation5 + $0x120] ss:$12 sps:$4 sm:$0xff]  }
 0x145   :  { %v2508_v14 = vld [vmem:[#allocation5 + $0x68] ss:$12 sps:$4 sm:$0xff]  }
 0x146   :  { %820 = vmatprep.mubr.bf16.mxu0 %v396_v21  ;;  %2166 = vmatmul.mubr.msk.bf16.vlgmr.msra.gmra.mrb[4].mxu1 %vm244_vm4, %v397_v22 }
 0x147   :  { %2251 = vmatpush3.bf16.msra.mxu1 %v2442_v18  ;;  %821 = vmatmul.mubr.bf16.vlgmr.msra.gmra.mrb[4].mxu0 %v395_v23  ;;  %v2512_v18 = vld [vmem:[#allocation5 + $0x140] ss:$12 sps:$4 sm:$0xff]  }
 0x148   :  { %902 = vmatprep.mubr.bf16.mxu1 %v396_v21  ;;  %2252 = vmatprep.subr.bf16.mxu1 %v2443_v24  ;;  %v2511_v21 = vld [vmem:[#allocation5 + $0x13c] ss:$12 sps:$4 sm:$0xff]   ;;  %v2517_v24 = vld [vmem:[#allocation5 + $0x158] ss:$12 sps:$4 sm:$0xff]  }
 0x149   :  { %2277 = vmatpush3.bf16.msra.mxu0 %v2488_v63 }
 0x14a   :  { %2278 = vmatprep.subr.bf16.mxu0 %v2492_v3 }
 0x14b   :  { %2253 = vmatpush3.bf16.msra.mxu1 %v2444_v25  ;;  %v2516_v25 = vld [vmem:[#allocation5 + $0x154] ss:$12 sps:$4 sm:$0xff]  }
 0x14c   :  { %2254 = vmatprep.subr.bf16.mxu1 %v2445_v26  ;;  %v2518_v26 = vld [vmem:[#allocation5 + $0x98] ss:$12 sps:$4 sm:$0xff]  }
 0x14d   :  { %2279 = vmatpush3.bf16.msra.mxu0 %v2493_v5 }
 0x14e   :  { %2280 = vmatprep.subr.bf16.mxu0 %v2497_v7 }
 0x14f   :  { %2255 = vmatpush3.bf16.msra.mxu1 %v2446_v27  ;;  %v2514_v27 = vld [vmem:[#allocation5 + $0x150] ss:$12 sps:$4 sm:$0xff]  }
 0x150   :  { %2256 = vmatprep.subr.bf16.mxu1 %v2447_v28  ;;  %v2522_v28 = vld [vmem:[#allocation5 + $0x170] ss:$12 sps:$4 sm:$0xff]  }
 0x151   :  { %2281 = vmatpush3.bf16.msra.mxu0 %v2498_v9 }
 0x152   :  { %2282 = vmatprep.subr.bf16.mxu0 %v2502_v37 }
 0x153   :  { %2257 = vmatpush3.bf16.msra.mxu1 %v2448_v30  ;;  %v2521_v30 = vld [vmem:[#allocation5 + $0x16c] ss:$12 sps:$4 sm:$0xff]  }
 0x154   :  { %2258 = vmatprep.subr.bf16.mxu1 %v2449_v31  ;;  %v2523_v31 = vld [vmem:[#allocation5 + $0xb0] ss:$12 sps:$4 sm:$0xff]  }
 0x155   :  { %2283 = vmatpush3.bf16.msra.mxu0 %v2503_v32 }
 0x156   :  { %2284 = vmatprep.subr.bf16.mxu0 %v2507_v12 }
 0x157   :  { %2259 = vmatpush3.bf16.msra.mxu1 %v2450_v33  ;;  %v2519_v33 = vld [vmem:[#allocation5 + $0x168] ss:$12 sps:$4 sm:$0xff]  }
 0x158   :  { %2260 = vmatprep.subr.bf16.mxu1 %v2451_v34  ;;  %v2526_v34 = vld [vmem:[#allocation5 + $0x184] ss:$12 sps:$4 sm:$0xff]  }
 0x159   :  { %2285 = vmatpush3.bf16.msra.mxu0 %v2508_v14 }
 0x15a   :  { %2286 = vmatprep.subr.bf16.mxu0 %v2512_v18 }
 0x15b   :  { %2261 = vmatpush3.bf16.msra.mxu1 %v2452_v35 }
 0x15c   :  { %2262 = vmatprep.subr.bf16.mxu1 %v2453_v36 }
 0x15f   :  { %2263 = vmatpush3.bf16.msra.mxu1 %v2454_v38 }
 0x160   :  { %2264 = vmatprep.subr.bf16.mxu1 %v2455_v39 }
 0x163   :  { %2265 = vmatpush3.bf16.msra.mxu1 %v2456_v40 }
 0x164   :  { %2334 = vmatprep.subr.bf16.mxu1 %v2655_v0 }
 0x166   :  { %903 = vmatmul.mubr.bf16.vlgmr.msra.gmra.mrb[8].mxu1 %v395_v23  ;;  %v2509_v23 = vld [vmem:[#allocation5 + $0x138] ss:$12 sps:$4 sm:$0xff]  }
 0x167   :  { %2335 = vmatpush3.bf16.msra.mxu1 %v2457_v41  ;;  %2340 = vmatprep.mubr.msk.bf16.mxu1 %vm2656_vm0, %v2655_v0 }
 0x168   :  { %2336 = vmatprep.subr.bf16.mxu1 %v2655_v0 }
 0x16b   :  { %2337 = vmatpush3.bf16.msra.mxu1 %v2458_v42 }
 0x16c   :  { %2338 = vmatprep.subr.bf16.mxu1 %v2655_v0 }
 0x16f   :  { %2339 = vmatpush3.bf16.msra.mxu1 %v786_v44 }
 0x170   :  { %1504 = vmatprep.subr.bf16.mxu1 %v2462_v45 }
 0x172   :  { %2341 = vmatmul.mubr.msk.bf16.vlgmr.msra.gmra.mrb[12].mxu1 %vm244_vm4, %v397_v22  ;;  %v2513_v22 = vld [vmem:[#allocation5 + $0x80] ss:$12 sps:$4 sm:$0xff]  }
 0x173   :  { %1505 = vmatpush1.bf16.msra.mxu1 %v2460_v46  ;;  %2287 = vmatpush3.bf16.msra.mxu0 %v2513_v22 }
 0x174   :  { %1506 = vmatprep.subr.bf16.mxu1 %v2465_v47  ;;  %2288 = vmatprep.subr.bf16.mxu0 %v2517_v24 }
 0x177   :  { %1507 = vmatpush1.bf16.msra.mxu1 %v2463_v49  ;;  %2289 = vmatpush3.bf16.msra.mxu0 %v2518_v26 }
 0x178   :  { %1508 = vmatprep.subr.bf16.mxu1 %v2468_v50  ;;  %2290 = vmatprep.subr.bf16.mxu0 %v2522_v28 }
 0x17b   :  { %1509 = vmatpush1.bf16.msra.mxu1 %v2466_v51  ;;  %2291 = vmatpush3.bf16.msra.mxu0 %v2523_v31 }
 0x17c   :  { %1510 = vmatprep.subr.bf16.mxu1 %v2471_v52  ;;  %2344 = vmatprep.subr.bf16.mxu0 %v2655_v0 }
 0x17f   :  { %1511 = vmatpush1.bf16.msra.mxu1 %v2469_v53 }
 0x180   :  { %1512 = vmatprep.subr.bf16.mxu1 %v2474_v54 }
 0x183   :  { %1513 = vmatpush1.bf16.msra.mxu1 %v2472_v55 }
 0x184   :  { %1514 = vmatprep.subr.bf16.mxu1 %v2477_v56 }
 0x187   :  { %1515 = vmatpush1.bf16.msra.mxu1 %v2475_v57 }
 0x188   :  { %1516 = vmatprep.subr.bf16.mxu1 %v2480_v58 }
 0x18b   :  { %1517 = vmatpush1.bf16.msra.mxu1 %v2478_v16 }
 0x18c   :  { %1518 = vmatprep.subr.bf16.mxu1 %v2483_v59 }
 0x18f   :  { %1519 = vmatpush1.bf16.msra.mxu1 %v2481_v60 }
 0x190   :  { %1520 = vmatprep.subr.bf16.mxu1 %v2486_v62 }
 0x193   :  { %1521 = vmatpush1.bf16.msra.mxu1 %v2484_v2 }
 0x194   :  { %1522 = vmatprep.subr.bf16.mxu1 %v2491_v4 }
 0x197   :  { %1523 = vmatpush1.bf16.msra.mxu1 %v2489_v6 }
 0x198   :  { %1524 = vmatprep.subr.bf16.mxu1 %v2496_v8 }
 0x19b   :  { %1525 = vmatpush1.bf16.msra.mxu1 %v2494_v10 }
 0x19c   :  { %1526 = vmatprep.subr.bf16.mxu1 %v2501_v29 }
 0x19f   :  { %1527 = vmatpush1.bf16.msra.mxu1 %v2499_v11 }
 0x1a0   :  { %1528 = vmatprep.subr.bf16.mxu1 %v2506_v13 }
 0x1a3   :  { %1529 = vmatpush1.bf16.msra.mxu1 %v2504_v15 }
 0x1a4   :  { %1530 = vmatprep.subr.bf16.mxu1 %v2511_v21 }
 0x1a7   :  { %1531 = vmatpush1.bf16.msra.mxu1 %v2509_v23 }
 0x1a8   :  { %1532 = vmatprep.subr.bf16.mxu1 %v2516_v25 }
 0x1ab   :  { %1533 = vmatpush1.bf16.msra.mxu1 %v2514_v27 }
 0x1ac   :  { %1534 = vmatprep.subr.bf16.mxu1 %v2521_v30 }
 0x1af   :  { %1535 = vmatpush1.bf16.msra.mxu1 %v2519_v33 }
 0x1b0   :  { %1545 = vmatprep.subr.bf16.mxu1 %v2526_v34 }
 0x219   :  { %v863_v35 = vpop.f32.mrb[4].mxu1 }
 0x21a   :  { %v822_v36 = vpop.f32.mrb[4].mxu0  ;;  %v865_v38 = vpop.f32.mrb[5].mxu1 }
 0x21b   :  { %v2822_v39 = vadd.f32 %v863_v35, %v822_v36  ;;  %v824_v40 = vpop.f32.mrb[5].mxu0  ;;  %v867_v41 = vpop.f32.mrb[6].mxu1 }
 0x21c   :  { %v2824_v42 = vadd.f32 %v865_v38, %v824_v40  ;;  %v826_v43 = vpop.f32.mrb[6].mxu0  ;;  %v868_v44 = vpop.f32.mrb[7].mxu1 }
 0x21d   :  { %v950_v45 = vrot.slane %v2822_v39, 4  ;;  %v972_v46 = vmul.f32 %v2822_v39, %v2822_v39  ;;  %v827_v47 = vpop.f32.mrb[7].mxu0 }
 0x21e   :  { %v956_v49 = vrot.slane %v2824_v42, 4  ;;  %v973_v50 = vmul.f32 %v2824_v42, %v2824_v42 }
 0x21f   :  { %v951_v51 = vadd.f32 %v950_v45, %v2822_v39  ;;  %v975_v52 = vrot.slane %v972_v46, 4 }
 0x220   :  { %v957_v53 = vadd.f32 %v956_v49, %v2824_v42  ;;  %v981_v54 = vrot.slane %v973_v50, 4 }
 0x221   :  { %v952_v55 = vrot.slane %v951_v51, 2  ;;  %v976_v56 = vadd.f32 %v975_v52, %v972_v46 }
 0x222   :  { %v958_v57 = vrot.slane %v957_v53, 2  ;;  %v982_v58 = vadd.f32 %v981_v54, %v973_v50 }
 0x223   :  { %v953_v16 = vadd.f32 %v952_v55, %v951_v51  ;;  %v977_v59 = vrot.slane %v976_v56, 2 }
 0x224   :  { %v959_v60 = vadd.f32 %v958_v57, %v957_v53  ;;  %v983_v61 = vrot.slane %v982_v58, 2 }
 0x225   :  { %v954_v62 = vrot.slane %v953_v16, 1  ;;  %v978_v63 = vadd.f32 %v977_v59, %v976_v56 }
 0x226   :  { %v960_v2 = vrot.slane %v959_v60, 1  ;;  %v984_v3 = vadd.f32 %v983_v61, %v982_v58 }
 0x227   :  { %v955_v4 = vadd.f32 %v954_v62, %v953_v16  ;;  %v979_v5 = vrot.slane %v978_v63, 1 }
 0x228   :  { %v961_v6 = vadd.f32 %v960_v2, %v959_v60  ;;  %v985_v7 = vrot.slane %v984_v3, 1 }
 0x229   :  { %v969_v8 = vmul.f32 0.125, %v955_v4  ;;  %v980_v9 = vadd.f32 %v979_v5, %v978_v63  ;;  %v2099_v4 = vld [vmem:[%s2990_s2 + $0x3] ss:$8 sm:$0x7] }
 0x22a   :  { %v970_v10 = vmul.f32 0.125, %v961_v6  ;;  %v986_v37 = vadd.f32 %v985_v7, %v984_v3 }
 0x22b   :  { %v994_v29 = vmul.f32 0.125, %v980_v9  ;;  %v997_v32 = vmul.f32 %v969_v8, %v969_v8 }
 0x22c   :  { %v995_v11 = vmul.f32 0.125, %v986_v37  ;;  %v998_v12 = vmul.f32 %v970_v10, %v970_v10 }
 0x22d   :  { %v1000_v13 = vsub.f32 %v994_v29, %v997_v32 }
 0x22e   :  { %v1001_v14 = vsub.f32 %v995_v11, %v998_v12 }
 0x22f   :  { %v1003_v15 = vmax.f32 %v1000_v13, 0.0 }
 0x230   :  { %v1004_v18 = vmax.f32 %v1001_v14, 0.0 }
 0x231   :  { %v1006_v21 = vadd.f32 1e-05, %v1003_v15 }
 0x232   :  { %v1007_v22 = vadd.f32 1e-05, %v1004_v18 }
 0x233   :  { %2563 = vrsqrt.f32 %v1006_v21 }
 0x234   :  { %2565 = vrsqrt.f32 %v1007_v22 }
 0x239   :  { %v2266_v23 = vpop.f32.mrb[8].mxu1 }
 0x23a   :  { %v2267_v24 = vpop.f32.mrb[9].mxu1 }
 0x23b   :  { %v2268_v25 = vadd.f32 %v2267_v24, %v2266_v23  ;;  %v2269_v26 = vpop.f32.mrb[10].mxu1  ;;  %v2100_v23 = vld [vmem:[%s2990_s2 + $0x4] ss:$8 sm:$0x7] }
 0x23c   :  { %v2270_v27 = vpop.f32.mrb[11].mxu1 }
 0x23d   :  { %v2564_v28 = vpop.eup %2563 }
 0x23e   :  { %v2566_v30 = vpop.eup %2565 }
 0x23f   :  { %v1015_v31 = vcombine.low %v2564_v28, %v2566_v30 }
 0x241   :  { %v1022_v63 = vrot.slane %v1015_v31, %v2790_v48 }
 0x245   :  { %v944_v33 = vpop.f32.mrb[12].mxu1 }
 0x246   :  { %v945_v34 = vadd.f32 %v2268_v25, %v944_v33  ;;  %v2342_v35 = vpop.f32.mrb[13].mxu1  ;;  %v2524_v33 = vld [vmem:[#allocation5 + $0x180] ss:$12 sps:$4 sm:$0xff]  }
 0x247   :  { %v947_v36 = vpop.f32.mrb[14].mxu1  ;;  %v2527_v35 = vld [vmem:[#allocation5 + $0x188] ss:$12 sps:$4 sm:$0xff]  }
 0x248   :  { %v962_v38 = vsel %vm244_vm4, %v945_v34, 0.0  ;;  %v974_v40 = vmul.f32 %v945_v34, %v945_v34  ;;  %v2343_v41 = vpop.f32.mrb[15].mxu1  ;;  %v2530_v36 = vld [vmem:[#allocation5 + $0x19c] ss:$12 sps:$4 sm:$0xff]  }
 0x249   :  { %v963_v43 = vrot.slane %v962_v38, 4  ;;  %v2532_v41 = vld [vmem:[#allocation5 + $0x1b4] ss:$12 sps:$4 sm:$0x3f]  }
 0x24a   :  { %v987_v44 = vsel %vm244_vm4, %v974_v40, 0.0  ;;  %v2531_v40 = vld [vmem:[#allocation5 + $0x1a0] ss:$12 sps:$4 sm:$0xff]  }
 0x24b   :  { %v964_v45 = vadd.f32 %v963_v43, %v962_v38  ;;  %v988_v46 = vrot.slane %v987_v44, 4  ;;  %v2528_v38 = vld [vmem:[#allocation5 + $0x198] ss:$12 sps:$4 sm:$0xff]   ;;  %v2534_v43 = vld [vmem:[#allocation5 + $0x1b0] ss:$12 sps:$4 sm:$0x3f]  }
 0x24d   :  { %v965_v47 = vrot.slane %v964_v45, 2  ;;  %v989_v49 = vadd.f32 %v988_v46, %v987_v44  ;;  %v2535_v44 = vld [vmem:[#allocation5 + $0x1b8] ss:$12 sps:$4 sm:$0x3f]   ;;  %v1496_v46 = vsel %vm778_vm3, %v2534_v43, 0 }
 0x24f   :  { %v966_v50 = vadd.f32 %v965_v47, %v964_v45  ;;  %v990_v51 = vrot.slane %v989_v49, 2  ;;  %v1502_v47 = vsel %vm778_vm3, %v2535_v44, 0 }
 0x251   :  { %v967_v52 = vrot.slane %v966_v50, 1  ;;  %v991_v53 = vadd.f32 %v990_v51, %v989_v49  ;;  %v2538_v51 = vld [vmem:[%s2994_s6 + $0x48] sm:$0xff]  }
 0x253   :  { %v968_v54 = vadd.f32 %v967_v52, %v966_v50  ;;  %v992_v55 = vrot.slane %v991_v53, 1  ;;  %v2537_v50 = vld [vmem:[%s2994_s6] sm:$0xff]   ;;  %v2539_v52 = vld [vmem:[%s2994_s6 + $0x8] sm:$0xff]  }
 0x255   :  { %v971_v56 = vmul.f32 0.125, %v968_v54  ;;  %v993_v57 = vadd.f32 %v992_v55, %v991_v53  ;;  %v2540_v53 = vld [vmem:[%s2994_s6 + $0x50] sm:$0xff]   ;;  %v2542_v55 = vld [vmem:[%s2994_s6 + $0x58] sm:$0xff]  }
 0x256   :  { %v2541_v54 = vld [vmem:[%s2994_s6 + $0x10] sm:$0xff]  }
 0x257   :  { %v996_v58 = vmul.f32 0.125, %v993_v57  ;;  %v999_v16 = vmul.f32 %v971_v56, %v971_v56  ;;  %v2544_v57 = vld [vmem:[%s2994_s6 + $0x60] sm:$0xff]  }
 0x259   :  { %v1002_v59 = vsub.f32 %v996_v58, %v999_v16  ;;  %v2545_v58 = vld [vmem:[%s2994_s6 + $0x20] sm:$0xff]   ;;  %v2546_v16 = vld [vmem:[%s2994_s6 + $0x68] sm:$0xff]  }
 0x25b   :  { %v1005_v60 = vmax.f32 %v1002_v59, 0.0  ;;  %v2547_v59 = vld [vmem:[%s2994_s6 + $0x80] sm:$0xff]  }
 0x25d   :  { %v1008_v61 = vadd.f32 1e-05, %v1005_v60  ;;  %v2548_v60 = vld [vmem:[%s2994_s6 + $0x28] sm:$0xff]  }
 0x25f   :  { %2567 = vrsqrt.f32 %v1008_v61  ;;  %v2550_v61 = vld [vmem:[%s2994_s6 + $0x88] sm:$0xff]  }
 0x269   :  { %v2568_v62 = vpop.eup %2567 }
 0x26a   :  { %v1029_v2 = vrot.slane %v2568_v62, %v2790_v48  ;;  %v2549_v62 = vld [vmem:[%s2994_s6 + $0x70] sm:$0xff]  }
 0x26c   :  { %v1030_v3 = vcombine.low %v1022_v63, %v1029_v2  ;;  %v2553_v63 = vld [vmem:[%s2994_s6 + $0x90] sm:$0x3f]  }
 0x26d   :  { %v2551_v2 = vld [vmem:[%s2994_s6 + $0x30] sm:$0xff]  }
 0x26e   :  { %v1037_v5 = vrot.slane %v1030_v3, %v2790_v48  ;;  %v2552_v3 = vld [vmem:[%s2994_s6 + $0x78] sm:$0xff]  }
 0x270   :  { %v1039_v6 = vmul.f32 %v2099_v4, %v1037_v5  ;;  %v1986_v4 = vsel %vm778_vm3, %v2553_v63, 0  ;;  %v2554_v5 = vld [vmem:[%s2994_s6 + $0x38] sm:$0xff]  }
 0x272   :  { %v1044_v7 = vrot.slane %v1039_v6, %v2762_v19  ;;  %v1048_v9 = vrot.slane %v1039_v6, %v2765_v20  ;;  %v1052_v37 = vrot.slane %v1039_v6, %v2756_v17 }
 0x274   :  { %v1056_v29 = vmul.f32 %v1044_v7, %v969_v8  ;;  %v1057_v32 = vmul.f32 %v1048_v9, %v970_v10  ;;  %v1058_v11 = vmul.f32 %v1052_v37, %v971_v56  ;;  %v1089_v12 = vmul.f32 %v1052_v37, %v945_v34  ;;  %v2543_v56 = vld [vmem:[%s2994_s6 + $0x18] sm:$0xff]  }
 0x275   :  { %v1088_v13 = vmul.f32 %v1048_v9, %v2824_v42  ;;  %v1087_v14 = vmul.f32 %v1044_v7, %v2822_v39 }
 0x276   :  { %v1062_v15 = vcombine.low %v1056_v29, %v1057_v32  ;;  %v1076_v21 = vrot.slane %v1058_v11, %v2790_v48 }
 0x278   :  { %v1069_v18 = vrot.slane %v1062_v15, %v2790_v48 }
 0x27a   :  { %v1077_v22 = vcombine.low %v1069_v18, %v1076_v21 }
 0x27c   :  { %v1084_v24 = vrot.slane %v1077_v22, %v2790_v48 }
 0x27e   :  { %v1086_v8 = vsub.f32 %v2100_v23, %v1084_v24 }
 0x280   :  { %v1102_v10 = vrot.slane %v1086_v8, %v2756_v17  ;;  %v1098_v25 = vrot.slane %v1086_v8, %v2765_v20  ;;  %v1094_v42 = vrot.slane %v1086_v8, %v2762_v19 }
 0x282   :  { %v1108_v39 = vadd.f32 %v1102_v10, %v1089_v12  ;;  %v1107_v26 = vadd.f32 %v1098_v25, %v1088_v13  ;;  %v1106_v27 = vadd.f32 %v1094_v42, %v1087_v14 }
 0x284   :  { %v1110_v28 = vmax.f32 %v1107_v26, 0.0  ;;  %v1109_v30 = vmax.f32 %v1106_v27, 0.0  ;;  %v1111_v45 = vmax.f32 %v1108_v39, 0.0 }
 0x286   :  { %v1113_v31 = vpack.c.bf16 %v1110_v28, %v1110_v28  ;;  %v1112_v34 = vpack.c.bf16 %v1109_v30, %v1109_v30  ;;  %v1114_v49 = vpack.c.bf16 %v1111_v45, %v1111_v45 }
 0x288   :  { %1536 = vmatprep.mubr.bf16.mxu1 %v1113_v31  ;;  %1618 = vmatprep.mubr.bf16.mxu0 %v1113_v31 }
 0x289   :  { %1537 = vmatmul.mubr.bf16.vlgmr.msra.gmra.mrb[16].mxu1 %v1112_v34  ;;  %1619 = vmatmul.mubr.bf16.vlgmr.msra.gmra.mrb[8].mxu0 %v1112_v34 }
 0x28a   :  { %1546 = vmatpush1.bf16.msra.mxu1 %v2524_v33  ;;  %2345 = vmatpush3.bf16.msra.mxu0 %v2527_v35 }
 0x28b   :  { %1547 = vmatprep.subr.bf16.mxu1 %v2530_v36  ;;  %2346 = vmatprep.subr.bf16.mxu0 %v2655_v0 }
 0x28c   :  { %2350 = vmatprep.mubr.msk.bf16.mxu0 %vm2656_vm0, %v2655_v0  ;;  %1577 = vmatprep.mubr.bf16.mxu1 %v2657_v1  ;;  %v2536_v1 = vld [vmem:[%s2994_s6 + $0x40] sm:$0xff]  }
 0x28e   :  { %1548 = vmatpush1.bf16.msra.mxu1 %v2528_v38  ;;  %2347 = vmatpush3.bf16.msra.mxu0 %v2531_v40 }
 0x28f   :  { %2225 = vmatprep.subr.msk.bf16.mxu1 %vm778_vm3, %v2532_v41  ;;  %2348 = vmatprep.subr.bf16.mxu0 %v2655_v0 }
 0x292   :  { %1550 = vmatpush1.bf16.msra.mxu1 %v1496_v46  ;;  %2349 = vmatpush3.bf16.msra.mxu0 %v1502_v47 }
 0x293   :  { %2354 = vmatprep.subr.bf16.mxu1 %v2655_v0  ;;  %2302 = vmatprep.subr.bf16.mxu0 %v2536_v1 }
 0x295   :  { %2351 = vmatmul.mubr.msk.bf16.vlgmr.msra.gmra.mrb[12].mxu0 %vm244_vm4, %v1114_v49  ;;  %2226 = vmatmul.mubr.msk.bf16.vlgmr.msra.gmra.mrb[16].mxu1 %vm244_vm4, %v1114_v49 }
 0x296   :  { %2360 = vmatprep.mubr.msk.bf16.mxu1 %vm2656_vm0, %v2655_v0  ;;  %2303 = vmatpush3.bf16.msra.mxu0 %v2537_v50 }
 0x297   :  { %2304 = vmatprep.subr.bf16.mxu0 %v2538_v51  ;;  %2355 = vmatpush3.bf16.msra.mxu1 %v2547_v59 }
 0x298   :  { %2356 = vmatprep.subr.bf16.mxu1 %v2655_v0 }
 0x29a   :  { %2305 = vmatpush3.bf16.msra.mxu0 %v2539_v52 }
 0x29b   :  { %2306 = vmatprep.subr.bf16.mxu0 %v2540_v53  ;;  %2357 = vmatpush3.bf16.msra.mxu1 %v2550_v61 }
 0x29c   :  { %2358 = vmatprep.subr.bf16.mxu1 %v2655_v0 }
 0x29e   :  { %2307 = vmatpush3.bf16.msra.mxu0 %v2541_v54 }
 0x29f   :  { %2308 = vmatprep.subr.bf16.mxu0 %v2542_v55  ;;  %2359 = vmatpush3.bf16.msra.mxu1 %v1986_v4 }
 0x2a2   :  { %2309 = vmatpush3.bf16.msra.mxu0 %v2543_v56 }
 0x2a3   :  { %2310 = vmatprep.subr.bf16.mxu0 %v2544_v57 }
 0x2a6   :  { %2311 = vmatpush3.bf16.msra.mxu0 %v2545_v58 }
 0x2a7   :  { %2312 = vmatprep.subr.bf16.mxu0 %v2546_v16 }
 0x2aa   :  { %2313 = vmatpush3.bf16.msra.mxu0 %v2548_v60 }
 0x2ab   :  { %2314 = vmatprep.subr.bf16.mxu0 %v2549_v62 }
 0x2ae   :  { %2315 = vmatpush3.bf16.msra.mxu0 %v2551_v2 }
 0x2af   :  { %2316 = vmatprep.subr.bf16.mxu0 %v2552_v3 }
 0x2b2   :  { %2317 = vmatpush3.bf16.msra.mxu0 %v2554_v5 }
 0x35c   :  { %v2292_v6 = vpop.f32.mrb[8].mxu0 }
 0x35d   :  { %v2293_v7 = vpop.f32.mrb[9].mxu0 }
 0x35e   :  { %v2294_v9 = vadd.f32 %v2293_v7, %v2292_v6  ;;  %v2295_v37 = vpop.f32.mrb[10].mxu0 }
 0x35f   :  { %v2296_v29 = vpop.f32.mrb[11].mxu0 }
 0x368   :  { %v1660_v0 = vpop.f32.mrb[12].mxu0  ;;  %v2929_v32 = vpop.f32.mrb[16].mxu1 }
 0x369   :  { %v2931_v11 = vadd.f32 %v2294_v9, %v1660_v0  ;;  %v1666_v12 = vrot.slane %v2929_v32, 4  ;;  %v1688_v13 = vmul.f32 %v2929_v32, %v2929_v32  ;;  %v2352_v14 = vpop.f32.mrb[13].mxu0  ;;  %v2936_v15 = vpop.f32.mrb[17].mxu1 }
 0x36a   :  { %v1672_v18 = vrot.slane %v2936_v15, 4  ;;  %v1689_v21 = vmul.f32 %v2936_v15, %v2936_v15  ;;  %v1663_v22 = vpop.f32.mrb[14].mxu0  ;;  %v1583_v23 = vpop.f32.mrb[18].mxu1 }
 0x36b   :  { %v1678_v24 = vsel %vm244_vm4, %v2931_v11, 0.0  ;;  %v1690_v8 = vmul.f32 %v2931_v11, %v2931_v11  ;;  %v1667_v10 = vadd.f32 %v1666_v12, %v2929_v32  ;;  %v1691_v25 = vrot.slane %v1688_v13, 4  ;;  %v2353_v42 = vpop.f32.mrb[15].mxu0  ;;  %v1584_v39 = vpop.f32.mrb[19].mxu1 }
 0x36c   :  { %v1679_v26 = vrot.slane %v1678_v24, 4  ;;  %v1673_v27 = vadd.f32 %v1672_v18, %v2936_v15  ;;  %v1697_v28 = vrot.slane %v1689_v21, 4 }
 0x36d   :  { %v1703_v30 = vsel %vm244_vm4, %v1690_v8, 0.0  ;;  %v1668_v31 = vrot.slane %v1667_v10, 2  ;;  %v1692_v33 = vadd.f32 %v1691_v25, %v1688_v13 }
 0x36e   :  { %v1680_v34 = vadd.f32 %v1679_v26, %v1678_v24  ;;  %v1704_v35 = vrot.slane %v1703_v30, 4  ;;  %v1674_v36 = vrot.slane %v1673_v27, 2  ;;  %v1698_v38 = vadd.f32 %v1697_v28, %v1689_v21 }
 0x36f   :  { %v1669_v40 = vadd.f32 %v1668_v31, %v1667_v10  ;;  %v1693_v41 = vrot.slane %v1692_v33, 2 }
 0x370   :  { %v1681_v43 = vrot.slane %v1680_v34, 2  ;;  %v1705_v44 = vadd.f32 %v1704_v35, %v1703_v30  ;;  %v1675_v45 = vadd.f32 %v1674_v36, %v1673_v27  ;;  %v1699_v46 = vrot.slane %v1698_v38, 2  ;;  %v2101_v27 = vld [vmem:[%s2990_s2 + $0x5] ss:$8 sm:$0x7] }
 0x371   :  { %v1670_v47 = vrot.slane %v1669_v40, 1  ;;  %v1694_v49 = vadd.f32 %v1693_v41, %v1692_v33 }
 0x372   :  { %v1682_v1 = vadd.f32 %v1681_v43, %v1680_v34  ;;  %v1706_v50 = vrot.slane %v1705_v44, 2  ;;  %v1676_v51 = vrot.slane %v1675_v45, 1  ;;  %v1700_v52 = vadd.f32 %v1699_v46, %v1698_v38 }
 0x373   :  { %v1671_v53 = vadd.f32 %v1670_v47, %v1669_v40  ;;  %v1695_v54 = vrot.slane %v1694_v49, 1 }
 0x374   :  { %v1683_v55 = vrot.slane %v1682_v1, 1  ;;  %v1707_v56 = vadd.f32 %v1706_v50, %v1705_v44  ;;  %v1677_v57 = vadd.f32 %v1676_v51, %v1675_v45  ;;  %v1701_v58 = vrot.slane %v1700_v52, 1 }
 0x375   :  { %v1685_v16 = vmul.f32 0.125, %v1671_v53  ;;  %v1696_v59 = vadd.f32 %v1695_v54, %v1694_v49  ;;  %v2102_v49 = vld [vmem:[%s2990_s2 + $0x6] ss:$8 sm:$0x7] }
 0x376   :  { %v1684_v60 = vadd.f32 %v1683_v55, %v1682_v1  ;;  %v1708_v61 = vrot.slane %v1707_v56, 1  ;;  %v1686_v62 = vmul.f32 0.125, %v1677_v57  ;;  %v1702_v63 = vadd.f32 %v1701_v58, %v1700_v52 }
 0x377   :  { %v1710_v2 = vmul.f32 0.125, %v1696_v59  ;;  %v1713_v3 = vmul.f32 %v1685_v16, %v1685_v16 }
 0x378   :  { %v1687_v4 = vmul.f32 0.125, %v1684_v60  ;;  %v1709_v5 = vadd.f32 %v1708_v61, %v1707_v56  ;;  %v1711_v6 = vmul.f32 0.125, %v1702_v63  ;;  %v1714_v7 = vmul.f32 %v1686_v62, %v1686_v62 }
 0x379   :  { %v1716_v9 = vsub.f32 %v1710_v2, %v1713_v3 }
 0x37a   :  { %v1712_v37 = vmul.f32 0.125, %v1709_v5  ;;  %v1715_v29 = vmul.f32 %v1687_v4, %v1687_v4  ;;  %v1717_v0 = vsub.f32 %v1711_v6, %v1714_v7 }
 0x37b   :  { %v1719_v12 = vmax.f32 %v1716_v9, 0.0 }
 0x37c   :  { %v1718_v13 = vsub.f32 %v1712_v37, %v1715_v29  ;;  %v1720_v14 = vmax.f32 %v1717_v0, 0.0 }
 0x37d   :  { %v1722_v18 = vadd.f32 1e-05, %v1719_v12 }
 0x37e   :  { %v1721_v21 = vmax.f32 %v1718_v13, 0.0  ;;  %v1723_v22 = vadd.f32 1e-05, %v1720_v14 }
 0x37f   :  { %2569 = vrsqrt.f32 %v1722_v18 }
 0x380   :  { %v1724_v23 = vadd.f32 1e-05, %v1721_v21  ;;  %2571 = vrsqrt.f32 %v1723_v22 }
 0x382   :  { %2573 = vrsqrt.f32 %v1724_v23 }
 0x389   :  { %v2570_v24 = vpop.eup %2569 }
 0x38a   :  { %v2572_v8 = vpop.eup %2571 }
 0x38b   :  { %v1731_v10 = vcombine.low %v2570_v24, %v2572_v8 }
 0x38c   :  { %v2574_v25 = vpop.eup %2573 }
 0x38d   :  { %v1738_v42 = vrot.slane %v1731_v10, %v2790_v48  ;;  %v1745_v39 = vrot.slane %v2574_v25, %v2790_v48 }
 0x38f   :  { %v1746_v26 = vcombine.low %v1738_v42, %v1745_v39 }
 0x391   :  { %v1753_v28 = vrot.slane %v1746_v26, %v2790_v48 }
 0x393   :  { %v1755_v30 = vmul.f32 %v2101_v27, %v1753_v28 }
 0x395   :  { %v1760_v31 = vrot.slane %v1755_v30, %v2762_v19  ;;  %v1764_v33 = vrot.slane %v1755_v30, %v2765_v20  ;;  %v1768_v34 = vrot.slane %v1755_v30, %v2756_v17 }
 0x397   :  { %v1772_v35 = vmul.f32 %v1760_v31, %v1685_v16  ;;  %v1773_v36 = vmul.f32 %v1764_v33, %v1686_v62  ;;  %v1774_v38 = vmul.f32 %v1768_v34, %v1687_v4  ;;  %v1804_v40 = vmul.f32 %v1764_v33, %v2936_v15 }
 0x398   :  { %v1805_v41 = vmul.f32 %v1768_v34, %v2931_v11  ;;  %v1803_v43 = vmul.f32 %v1760_v31, %v2929_v32 }
 0x399   :  { %v1778_v44 = vcombine.low %v1772_v35, %v1773_v36  ;;  %v1792_v46 = vrot.slane %v1774_v38, %v2790_v48 }
 0x39b   :  { %v1785_v45 = vrot.slane %v1778_v44, %v2790_v48 }
 0x39d   :  { %v1793_v47 = vcombine.low %v1785_v45, %v1792_v46 }
 0x39f   :  { %v1800_v1 = vrot.slane %v1793_v47, %v2790_v48 }
 0x3a1   :  { %v1802_v50 = vsub.f32 %v2102_v49, %v1800_v1 }
 0x3a3   :  { %v1814_v51 = vrot.slane %v1802_v50, %v2765_v20  ;;  %v1818_v15 = vrot.slane %v1802_v50, %v2756_v17  ;;  %v1810_v11 = vrot.slane %v1802_v50, %v2762_v19  ;;  %v71_v17 = vld [vmem:[%s2990_s2 + $0x7] ss:$0 sm:$0xff]  ;;  %s2659_s2 = smov [#allocation7]  }
 0x3a4   :  { %s2087_s1 = sshll.u32 %s2659_s2, 4  ;;  %s2088_s1 = int_to_ptr.vmem [resolvable:$true] %s2087_s1 }
 0x3a5   :  { %v1823_v32 = vadd.f32 %v1814_v51, %v1804_v40  ;;  %v1824_v52 = vadd.f32 %v1818_v15, %v1805_v41  ;;  %v1822_v53 = vadd.f32 %v1810_v11, %v1803_v43  ;;  %s2623_s3 = scalar_lea.vmem %s2088_s1, 128  ;;  %p2628_p3 = scmp.lt.s32.totalorder %s2088_s1, %s2088_s1 }
 0x3a6   :  { %p2624_p2 = scmp.ne.s32.totalorder %s2088_s1, %s2623_s3  ;;  %p2629_p4 = scmp.lt.s32.totalorder %s2623_s3, %s2623_s3 }
 0x3a7   :  { %v1826_v54 = vmax.f32 %v1823_v32, 0.0  ;;  %v1827_v55 = vmax.f32 %v1824_v52, 0.0  ;;  %v1825_v56 = vmax.f32 %v1822_v53, 0.0 }
 0x3a8   :  { %p2630_p5 = por %p2629_p4, %p2628_p3 }
 0x3a9   :  { %v1829_v57 = vpack.c.bf16 %v1826_v54, %v1826_v54  ;;  %v1830_v58 = vpack.c.bf16 %v1827_v55, %v1827_v55  ;;  %v1828_v16 = vpack.c.bf16 %v1825_v56, %v1825_v56 }
 0x3aa   :  { %p2631_p6 = pnand %p2630_p5, %p2624_p2 }
 0x3ab   :  { %2020 = vmatprep.mubr.bf16.mxu0 %v1829_v57  ;;  %2361 = vmatmul.mubr.msk.bf16.vlgmr.msra.gmra.mrb[20].mxu1 %vm244_vm4, %v1830_v58 }
 0x3ac   :  { %2021 = vmatmul.mubr.bf16.vlgmr.msra.gmra.mrb[16].mxu0 %v1828_v16 }
 0x47e   :  { %v2062_v48 = vpop.f32.mrb[20].mxu1 }
 0x47f   :  { %v2318_v59 = vpop.f32.mrb[16].mxu0  ;;  %v2362_v20 = vpop.f32.mrb[21].mxu1 }
 0x480   :  { %v2319_v19 = vpop.f32.mrb[17].mxu0  ;;  %v2065_v60 = vpop.f32.mrb[22].mxu1 }
 0x481   :  { %v2320_v61 = vadd.f32 %v2319_v19, %v2318_v59  ;;  %v2321_v62 = vpop.f32.mrb[18].mxu0  ;;  %v2363_v63 = vpop.f32.mrb[23].mxu1 }
 0x482   :  { %v2322_v2 = vpop.f32.mrb[19].mxu0 }
 0x483   :  { %v2023_v3 = vadd.f32 %v2320_v61, %v71_v17 }
 0x485   :  { %v2063_v4 = vadd.f32 %v2062_v48, %v2023_v3 }
 0x487   :  { %v2069_v5 = vsel %vm2068_vm5, %v2063_v4, -inf }
 0x488   :  { %2070 = vmax.xlane.f32.xlu0 %v2069_v5 }
 0x515   :  { %v2071_v6 = vpop.xlane.xlu0 %2070 }
 0x516   :  { %v2072_v7 = vsub.f32 %v2063_v4, %v2071_v6 }
 0x518   :  { %v2073_v9 = vmul.f32 1.442695, %v2072_v7 }
 0x51a   :  { %2575 = vpow2.f32 %v2073_v9 }
 0x524   :  { %v2576_v37 = vpop.eup %2575 }
 0x525   :  { %v2075_v29 = vsel %vm2068_vm5, %v2576_v37, 0.0 }
 0x526   :  { %2076 = vadd.xlane.f32.xlu1 %v2075_v29 }
 0x5b3   :  { %v2077_v0 = vpop.xlane.xlu1 %2076 }
 0x5b4   :  { %2577 = vrcp.f32 %v2077_v0 }
 0x5be   :  { %v2578_v12 = vpop.eup %2577 }
 0x5bf   :  { %v2079_v13 = vmul.f32 %v2578_v12, %v2576_v37 }
 0x5c1   :  { %2080 = vst.msk [vmem:[#allocation7] sm:$0xff] %vm2068_vm5, %v2079_v13 }
 0x5c2   :  { %2634 = shalt.err (!%p2631_p6)
}
 0x5c3   :  { %s2635_s14 = scalar_lea.hbm %s2995_s7, 128 }
 0x5c4   :  { %p2636_p7 = scmp.ne.s32.totalorder %s2995_s7, %s2635_s14  ;;  %p2639_p8 = scmp.lt.u32.totalorder %s2635_s14, %s2995_s7 }
 0x5c6   :  { %p2641_p9 = pnand %p2639_p8, %p2636_p7 }
 0x5c8   :  { %2644 = shalt.err (!%p2641_p9)
}
 0x5c9   :  { %2090 = dma.vmem_to_hbm [thread:$0]  %s2088_s1, 128, %s2995_s7, [#allocation4]  }
 0x5ca   :  { %2649 = dma.done.wait [#allocation4], 128  }
 0x5cb   :  { %2650 = vsyncadd [#allocation4], 4294967168 }
 0x5cc   :  { %2094 = vsyncpa [#allocation3], 1 }
 0x5cd   :  { %2095 = vsyncpa [#allocation6], 1 }
 0x5ce   :  { %2096 = vsyncpa [#allocation4], 1 }

</bundles_post_ra>
